<compile_context>
chip_gen: v6e
topology: v6e:2x2x1
jax: 0.10.0
libtpu: 0.0.40
codegen_flags: <defaults>
</compile_context>

<pallas_src>
import functools

import jax
import jax.numpy as jnp
from jax.experimental import pallas as pl
from jax.experimental.pallas import tpu as pltpu

HIDDEN = 512
LANE = 128
MIN_TILE = 8


def _round_up(x, m):
    return (x + m - 1) // m * m


def _choose_tile(B, batch_tile):
    """Split B as evenly as possible across grid steps.

    Returns (tile, B_pad) with tile a multiple of 8 and B_pad = tile * steps.
    Forces >= 2 grid steps when there is enough work per step, so the
    "parallel" batch axis can occupy both TensorCores on 2-TC chips (v7x).
    """
    n_steps = max(1, (B + batch_tile - 1) // batch_tile)
    if n_steps == 1 and B >= 2 * 128:
        n_steps = 2
    tile = _round_up((B + n_steps - 1) // n_steps, MIN_TILE)
    return tile, tile * n_steps


def mlp_kernel(x_ref, w1_ref, b1_ref, wh_ref, bh_ref, w6_ref, b6_ref, o_ref):
    """One batch tile through all 6 layers; all weights resident in VMEM.

    Each matmul hits the MXU with bf16 inputs and an f32 accumulator; bias-add
    and ReLU run in f32 on the VPU, then the activation is cast back to bf16
    for the next MXU pass.
    """
    h = x_ref[...]  # already bf16 (cast in wrapper)

    def linear_relu(h_bf16, w, b):
        y = jnp.dot(h_bf16, w, preferred_element_type=jnp.float32)
        y = jnp.maximum(y + b, 0.0)          # b is (1, out) -> broadcast over batch
        return y.astype(jnp.bfloat16)

    # Layer 1: input_size -> 512
    h = linear_relu(h, w1_ref[...], b1_ref[...])

    # Layers 2-5: four identical 512 -> 512 layers, stacked on axis 0.
    for l in range(wh_ref.shape[0]):         # static unroll
        h = linear_relu(h, wh_ref[l], bh_ref[l])

    # Layer 6: 512 -> num_classes (padded to 128 lanes), no ReLU.
    logits = jnp.dot(h, w6_ref[...], preferred_element_type=jnp.float32)
    logits = logits + b6_ref[...]
    o_ref[...] = logits.astype(o_ref.dtype)


@functools.partial(jax.jit, static_argnames=("batch_tile",))
def neural_network_forward(x, params, *, batch_tile=512):
    """params: list of (w, b) with w shaped (in, out), b shaped (1, out).

    batch_tile: upper bound on rows per grid step. ~512-1024 is a good range
    on v6e/v7x; 256-512 on v5e. Default 512 is a portable choice.
    """
    B, input_size = x.shape
    num_classes = params[-1][0].shape[1]
    n_layers = len(params)
    assert n_layers == 6, "expected the 6-layer MLP from the PyTorch module"

    # --- batch tiling: even split across grid steps, pad ragged remainder ---
    tile, B_pad = _choose_tile(B, batch_tile)
    x = x.astype(jnp.bfloat16)
    if B_pad != B:
        x = jnp.pad(x, ((0, B_pad - B), (0, 0)))

    # --- weights: bf16 matmul inputs, f32 biases ----------------------------
    C_pad = _round_up(num_classes, LANE)

    w1 = params[0][0].astype(jnp.bfloat16)
    b1 = params[0][1].astype(jnp.float32)

    # Stack the four identical 512x512 hidden layers into single arrays.
    wh = jnp.stack([params[i][0].astype(jnp.bfloat16) for i in range(1, 5)])
    bh = jnp.stack([params[i][1].astype(jnp.float32) for i in range(1, 5)])

    w6 = params[5][0].astype(jnp.bfloat16)
    b6 = params[5][1].astype(jnp.float32)
    if C_pad != num_classes:                 # lane-dense final output tile
        w6 = jnp.pad(w6, ((0, 0), (0, C_pad - num_classes)))
        b6 = jnp.pad(b6, ((0, 0), (0, C_pad - num_classes)))

    in_specs = [
        pl.BlockSpec((tile, input_size), lambda i: (i, 0)),
        pl.BlockSpec(w1.shape, lambda i: (0, 0)),
        pl.BlockSpec(b1.shape, lambda i: (0, 0)),
        pl.BlockSpec(wh.shape, lambda i: (0, 0, 0)),
        pl.BlockSpec(bh.shape, lambda i: (0, 0, 0)),
        pl.BlockSpec(w6.shape, lambda i: (0, 0)),
        pl.BlockSpec(b6.shape, lambda i: (0, 0)),
    ]
    out_spec = pl.BlockSpec((tile, C_pad), lambda i: (i, 0))

    out = pl.pallas_call(
        mlp_kernel,
        out_shape=jax.ShapeDtypeStruct((B_pad, C_pad), jnp.float32),
        grid_spec=pltpu.PrefetchScalarGridSpec(
            num_scalar_prefetch=0,
            grid=(B_pad // tile,),
            in_specs=in_specs,
            out_specs=out_spec,
        ),
        compiler_params=pltpu.CompilerParams(
            dimension_semantics=("parallel",),
            # Weights ~2.2 MiB bf16 (double-buffered ~4.4 MiB) + pipelined
            # x/out tiles + activation scratch stays well under this even at
            # tile=1024; 48 MiB also leaves headroom on v7x's 64 MiB VMEM.
            vmem_limit_bytes=48 * 1024 * 1024,
        ),
    )(x, w1, b1, wh, bh, w6, b6)

    return out[:B, :num_classes]


def init_params(key, input_size, num_classes):
    """Deterministic init mirroring the PyTorch module's layer shapes.

    nn.Linear(in, out) holds W:(out, in), b:(out,). We store W transposed as
    (in, out) and b as (1, out).
    """
    dims = [input_size, HIDDEN, HIDDEN, HIDDEN, HIDDEN, HIDDEN, num_classes]
    params = []
    for i in range(len(dims) - 1):
        key, kw, kb = jax.random.split(key, 3)
        fan_in = dims[i]
        bound = 1.0 / jnp.sqrt(fan_in)
        w = jax.random.uniform(kw, (dims[i], dims[i + 1]), jnp.float32,
                               minval=-bound, maxval=bound)
        b = jax.random.uniform(kb, (1, dims[i + 1]), jnp.float32,
                               minval=-bound, maxval=bound)
        params.append((w, b))
    return params


def reference_forward(x, params):
    """Pure-JAX reference mirroring the kernel's bf16-input / f32-acc math."""
    h = x.astype(jnp.bfloat16)
    n = len(params)
    for i, (w, b) in enumerate(params):
        h = jnp.dot(h, w.astype(jnp.bfloat16),
                    preferred_element_type=jnp.float32) + b.astype(jnp.float32)
        if i < n - 1:
            h = jnp.maximum(h, 0.0).astype(jnp.bfloat16)
    return h


if __name__ == "__main__":
    key = jax.random.PRNGKey(0)
    key, kx, kp = jax.random.split(key, 3)

    batch = 8
    input_size = 32
    num_classes = 10

    x = jax.random.normal(kx, (batch, input_size), jnp.float32)
    params = init_params(kp, input_size, num_classes)

    out = jax.block_until_ready(neural_network_forward(x, params))
    ref = reference_forward(x, params)

    assert out.shape == (batch, num_classes)
    assert jnp.allclose(out, ref, atol=1e-2, rtol=1e-2), "mismatch vs JAX reference"

    print("KERNEL_OK")
</pallas_src>

<mosaic_0001>
module attributes {stable_mosaic.version = 11 : i64} {
  func.func @mlp_kernel(%arg0: i32, %arg1: memref<8x32xbf16, #tpu.memory_space<vmem>>, %arg2: memref<32x512xbf16, #tpu.memory_space<vmem>>, %arg3: memref<1x512xf32, #tpu.memory_space<vmem>>, %arg4: memref<4x512x512xbf16, #tpu.memory_space<vmem>>, %arg5: memref<4x1x512xf32, #tpu.memory_space<vmem>>, %arg6: memref<512x128xbf16, #tpu.memory_space<vmem>>, %arg7: memref<1x128xf32, #tpu.memory_space<vmem>>, %arg8: memref<8x128xf32, #tpu.memory_space<vmem>>) attributes {dimension_semantics = [#tpu.dimension_semantics<parallel>], iteration_bounds = array<i64: 1>, scalar_prefetch = 0 : i64, scratch_operands = 0 : i64, tpu.core_type = #tpu.core_type<tc>, window_params = [{transform_indices = @transform_0, window_bounds = array<i64: 8, 32>}, {pipeline_mode = #tpu.pipeline_mode<synchronous>, transform_indices = @transform_1, window_bounds = array<i64: 32, 512>}, {pipeline_mode = #tpu.pipeline_mode<synchronous>, transform_indices = @transform_2, window_bounds = array<i64: 1, 512>}, {pipeline_mode = #tpu.pipeline_mode<synchronous>, transform_indices = @transform_3, window_bounds = array<i64: 4, 512, 512>}, {pipeline_mode = #tpu.pipeline_mode<synchronous>, transform_indices = @transform_4, window_bounds = array<i64: 4, 1, 512>}, {pipeline_mode = #tpu.pipeline_mode<synchronous>, transform_indices = @transform_5, window_bounds = array<i64: 512, 128>}, {pipeline_mode = #tpu.pipeline_mode<synchronous>, transform_indices = @transform_6, window_bounds = array<i64: 1, 128>}, {transform_indices = @transform_7, window_bounds = array<i64: 8, 128>}]} {
    %c0 = arith.constant 0 : index
    %c0_0 = arith.constant 0 : index
    %0 = vector.load %arg1[%c0, %c0_0] : memref<8x32xbf16, #tpu.memory_space<vmem>>, vector<8x32xbf16>
    %c0_1 = arith.constant 0 : index
    %c0_2 = arith.constant 0 : index
    %1 = vector.load %arg2[%c0_1, %c0_2] : memref<32x512xbf16, #tpu.memory_space<vmem>>, vector<32x512xbf16>
    %c0_3 = arith.constant 0 : index
    %c0_4 = arith.constant 0 : index
    %2 = vector.load %arg3[%c0_3, %c0_4] : memref<1x512xf32, #tpu.memory_space<vmem>>, vector<1x512xf32>
    %cst = arith.constant dense<0.000000e+00> : vector<8x512xf32>
    %3 = tpu.matmul %0, %1, %cst {dimension_numbers = #tpu.dot_dimension_numbers<[1], [0], [0], [1], [0, 0, 1, 1], [], []>} : vector<8x32xbf16>, vector<32x512xbf16>, vector<8x512xf32> -> vector<8x512xf32>
    %4 = vector.broadcast %2 : vector<1x512xf32> to vector<8x512xf32>
    %5 = arith.addf %3, %4 : vector<8x512xf32>
    %cst_5 = arith.constant 0.000000e+00 : f32
    %6 = vector.broadcast %cst_5 : f32 to vector<8x512xf32>
    %7 = arith.maximumf %5, %6 : vector<8x512xf32>
    %8 = arith.truncf %7 : vector<8x512xf32> to vector<8x512xbf16>
    %c0_6 = arith.constant 0 : index
    %c0_7 = arith.constant 0 : index
    %c0_8 = arith.constant 0 : index
    %9 = vector.load %arg4[%c0_6, %c0_7, %c0_8] : memref<4x512x512xbf16, #tpu.memory_space<vmem>>, vector<1x512x512xbf16>
    %10 = vector.shape_cast %9 : vector<1x512x512xbf16> to vector<512x512xbf16>
    %c0_9 = arith.constant 0 : index
    %c0_10 = arith.constant 0 : index
    %c0_11 = arith.constant 0 : index
    %11 = vector.load %arg5[%c0_9, %c0_10, %c0_11] : memref<4x1x512xf32, #tpu.memory_space<vmem>>, vector<1x1x512xf32>
    %12 = vector.shape_cast %11 : vector<1x1x512xf32> to vector<1x512xf32>
    %cst_12 = arith.constant dense<0.000000e+00> : vector<8x512xf32>
    %13 = tpu.matmul %8, %10, %cst_12 {dimension_numbers = #tpu.dot_dimension_numbers<[1], [0], [0], [1], [0, 0, 1, 1], [], []>} : vector<8x512xbf16>, vector<512x512xbf16>, vector<8x512xf32> -> vector<8x512xf32>
    %14 = vector.broadcast %12 : vector<1x512xf32> to vector<8x512xf32>
    %15 = arith.addf %13, %14 : vector<8x512xf32>
    %cst_13 = arith.constant 0.000000e+00 : f32
    %16 = vector.broadcast %cst_13 : f32 to vector<8x512xf32>
    %17 = arith.maximumf %15, %16 : vector<8x512xf32>
    %18 = arith.truncf %17 : vector<8x512xf32> to vector<8x512xbf16>
    %c1 = arith.constant 1 : index
    %c0_14 = arith.constant 0 : index
    %c0_15 = arith.constant 0 : index
    %19 = vector.load %arg4[%c1, %c0_14, %c0_15] : memref<4x512x512xbf16, #tpu.memory_space<vmem>>, vector<1x512x512xbf16>
    %20 = vector.shape_cast %19 : vector<1x512x512xbf16> to vector<512x512xbf16>
    %c1_16 = arith.constant 1 : index
    %c0_17 = arith.constant 0 : index
    %c0_18 = arith.constant 0 : index
    %21 = vector.load %arg5[%c1_16, %c0_17, %c0_18] : memref<4x1x512xf32, #tpu.memory_space<vmem>>, vector<1x1x512xf32>
    %22 = vector.shape_cast %21 : vector<1x1x512xf32> to vector<1x512xf32>
    %cst_19 = arith.constant dense<0.000000e+00> : vector<8x512xf32>
    %23 = tpu.matmul %18, %20, %cst_19 {dimension_numbers = #tpu.dot_dimension_numbers<[1], [0], [0], [1], [0, 0, 1, 1], [], []>} : vector<8x512xbf16>, vector<512x512xbf16>, vector<8x512xf32> -> vector<8x512xf32>
    %24 = vector.broadcast %22 : vector<1x512xf32> to vector<8x512xf32>
    %25 = arith.addf %23, %24 : vector<8x512xf32>
    %cst_20 = arith.constant 0.000000e+00 : f32
    %26 = vector.broadcast %cst_20 : f32 to vector<8x512xf32>
    %27 = arith.maximumf %25, %26 : vector<8x512xf32>
    %28 = arith.truncf %27 : vector<8x512xf32> to vector<8x512xbf16>
    %c2 = arith.constant 2 : index
    %c0_21 = arith.constant 0 : index
    %c0_22 = arith.constant 0 : index
    %29 = vector.load %arg4[%c2, %c0_21, %c0_22] : memref<4x512x512xbf16, #tpu.memory_space<vmem>>, vector<1x512x512xbf16>
    %30 = vector.shape_cast %29 : vector<1x512x512xbf16> to vector<512x512xbf16>
    %c2_23 = arith.constant 2 : index
    %c0_24 = arith.constant 0 : index
    %c0_25 = arith.constant 0 : index
    %31 = vector.load %arg5[%c2_23, %c0_24, %c0_25] : memref<4x1x512xf32, #tpu.memory_space<vmem>>, vector<1x1x512xf32>
    %32 = vector.shape_cast %31 : vector<1x1x512xf32> to vector<1x512xf32>
    %cst_26 = arith.constant dense<0.000000e+00> : vector<8x512xf32>
    %33 = tpu.matmul %28, %30, %cst_26 {dimension_numbers = #tpu.dot_dimension_numbers<[1], [0], [0], [1], [0, 0, 1, 1], [], []>} : vector<8x512xbf16>, vector<512x512xbf16>, vector<8x512xf32> -> vector<8x512xf32>
    %34 = vector.broadcast %32 : vector<1x512xf32> to vector<8x512xf32>
    %35 = arith.addf %33, %34 : vector<8x512xf32>
    %cst_27 = arith.constant 0.000000e+00 : f32
    %36 = vector.broadcast %cst_27 : f32 to vector<8x512xf32>
    %37 = arith.maximumf %35, %36 : vector<8x512xf32>
    %38 = arith.truncf %37 : vector<8x512xf32> to vector<8x512xbf16>
    %c3 = arith.constant 3 : index
    %c0_28 = arith.constant 0 : index
    %c0_29 = arith.constant 0 : index
    %39 = vector.load %arg4[%c3, %c0_28, %c0_29] : memref<4x512x512xbf16, #tpu.memory_space<vmem>>, vector<1x512x512xbf16>
    %40 = vector.shape_cast %39 : vector<1x512x512xbf16> to vector<512x512xbf16>
    %c3_30 = arith.constant 3 : index
    %c0_31 = arith.constant 0 : index
    %c0_32 = arith.constant 0 : index
    %41 = vector.load %arg5[%c3_30, %c0_31, %c0_32] : memref<4x1x512xf32, #tpu.memory_space<vmem>>, vector<1x1x512xf32>
    %42 = vector.shape_cast %41 : vector<1x1x512xf32> to vector<1x512xf32>
    %cst_33 = arith.constant dense<0.000000e+00> : vector<8x512xf32>
    %43 = tpu.matmul %38, %40, %cst_33 {dimension_numbers = #tpu.dot_dimension_numbers<[1], [0], [0], [1], [0, 0, 1, 1], [], []>} : vector<8x512xbf16>, vector<512x512xbf16>, vector<8x512xf32> -> vector<8x512xf32>
    %44 = vector.broadcast %42 : vector<1x512xf32> to vector<8x512xf32>
    %45 = arith.addf %43, %44 : vector<8x512xf32>
    %cst_34 = arith.constant 0.000000e+00 : f32
    %46 = vector.broadcast %cst_34 : f32 to vector<8x512xf32>
    %47 = arith.maximumf %45, %46 : vector<8x512xf32>
    %48 = arith.truncf %47 : vector<8x512xf32> to vector<8x512xbf16>
    %c0_35 = arith.constant 0 : index
    %c0_36 = arith.constant 0 : index
    %49 = vector.load %arg6[%c0_35, %c0_36] : memref<512x128xbf16, #tpu.memory_space<vmem>>, vector<512x128xbf16>
    %cst_37 = arith.constant dense<0.000000e+00> : vector<8x128xf32>
    %50 = tpu.matmul %48, %49, %cst_37 {dimension_numbers = #tpu.dot_dimension_numbers<[1], [0], [0], [1], [0, 0, 1, 1], [], []>} : vector<8x512xbf16>, vector<512x128xbf16>, vector<8x128xf32> -> vector<8x128xf32>
    %c0_38 = arith.constant 0 : index
    %c0_39 = arith.constant 0 : index
    %51 = vector.load %arg7[%c0_38, %c0_39] : memref<1x128xf32, #tpu.memory_space<vmem>>, vector<1x128xf32>
    %52 = vector.broadcast %51 : vector<1x128xf32> to vector<8x128xf32>
    %53 = arith.addf %50, %52 : vector<8x128xf32>
    %c0_40 = arith.constant 0 : index
    %c0_41 = arith.constant 0 : index
    %54 = vector.load %arg8[%c0_40, %c0_41] : memref<8x128xf32, #tpu.memory_space<vmem>>, vector<8x128xf32>
    tpu.vector_store %arg8[%c0_40, %c0_41], %53 {strides = array<i32>} : memref<8x128xf32, #tpu.memory_space<vmem>>, vector<8x128xf32>,
    return
  }
  func.func @transform_0(%arg0: i32) -> (i32, i32) {
    %c0_i32 = arith.constant 0 : i32
    %c0_i32_0 = arith.constant 0 : i32
    return %arg0, %c0_i32 : i32, i32
  }
  func.func @transform_1(%arg0: i32) -> (i32, i32) {
    %c0_i32 = arith.constant 0 : i32
    %c0_i32_0 = arith.constant 0 : i32
    %c0_i32_1 = arith.constant 0 : i32
    return %c0_i32, %c0_i32_0 : i32, i32
  }
  func.func @transform_2(%arg0: i32) -> (i32, i32) {
    %c0_i32 = arith.constant 0 : i32
    %c0_i32_0 = arith.constant 0 : i32
    %c0_i32_1 = arith.constant 0 : i32
    return %c0_i32, %c0_i32_0 : i32, i32
  }
  func.func @transform_3(%arg0: i32) -> (i32, i32, i32) {
    %c0_i32 = arith.constant 0 : i32
    %c0_i32_0 = arith.constant 0 : i32
    %c0_i32_1 = arith.constant 0 : i32
    %c0_i32_2 = arith.constant 0 : i32
    return %c0_i32, %c0_i32_0, %c0_i32_1 : i32, i32, i32
  }
  func.func @transform_4(%arg0: i32) -> (i32, i32, i32) {
    %c0_i32 = arith.constant 0 : i32
    %c0_i32_0 = arith.constant 0 : i32
    %c0_i32_1 = arith.constant 0 : i32
    %c0_i32_2 = arith.constant 0 : i32
    return %c0_i32, %c0_i32_0, %c0_i32_1 : i32, i32, i32
  }
  func.func @transform_5(%arg0: i32) -> (i32, i32) {
    %c0_i32 = arith.constant 0 : i32
    %c0_i32_0 = arith.constant 0 : i32
    %c0_i32_1 = arith.constant 0 : i32
    return %c0_i32, %c0_i32_0 : i32, i32
  }
  func.func @transform_6(%arg0: i32) -> (i32, i32) {
    %c0_i32 = arith.constant 0 : i32
    %c0_i32_0 = arith.constant 0 : i32
    %c0_i32_1 = arith.constant 0 : i32
    return %c0_i32, %c0_i32_0 : i32, i32
  }
  func.func @transform_7(%arg0: i32) -> (i32, i32) {
    %c0_i32 = arith.constant 0 : i32
    %c0_i32_0 = arith.constant 0 : i32
    return %arg0, %c0_i32 : i32, i32
  }
}

</mosaic_0001>

<bundles_post_ra>
// kernel: neural_network_forward.1
= control target key start
LH: loop header
LB: loop body
LE: loop exit
PB: predicated region body
PF: predicated region fallthrough
CT: control target
= control target key end

     0   :  { %v6227_v2 = vmov 0   ;;  %vm99_vm0 = vcmask 261120   ;;  %s8039_s0 = inlined_call_operand.vmem [shape: bf16[8,32], index: 0, kind: input, shape index: {}]   ;;  %s8040_s1 = inlined_call_operand.vmem [shape: bf16[32,512], index: 1, kind: input, shape index: {}]   ;;  %s8041_s2 = inlined_call_operand.vmem [shape: f32[1,512], index: 2, kind: input, shape index: {}]   ;;  %s8042_s3 = inlined_call_operand.vmem [shape: bf16[4,512,512], index: 3, kind: input, shape index: {}]   ;;  %s8043_s4 = inlined_call_operand.vmem [shape: f32[4,1,512], index: 4, kind: input, shape index: {}]   ;;  %s8044_s5 = inlined_call_operand.vmem [shape: bf16[512,128], index: 5, kind: input, shape index: {}]   ;;  %s8045_s6 = inlined_call_operand.vmem [shape: f32[1,128], index: 6, kind: input, shape index: {}]   ;;  %s8046_s7 = inlined_call_operand.hbm [shape: f32[8,128], index: 7, kind: output, shape index: {}]  }
   0x1   :  { %v5393_v0 = vld [vmem:[%s8040_s1 + $0x24] ss:$16 sps:$4 sm:$0xff]   ;;  %v5395_v1 = vld [vmem:[%s8040_s1 + $0x2c] ss:$16 sps:$4 sm:$0xff]   ;;  %135 = vmatprep.mubr.bf16.mxu0 %v6227_v2  ;;  %176 = vmatprep.mubr.bf16.mxu1 %v6227_v2  ;;  %v5397_v3 = vld [vmem:[%s8040_s1 + $0x20] ss:$16 sps:$4 sm:$0xff]  }
   0x2   :  { %115 = vmatprep.subr.bf16.mxu0 %v5393_v0  ;;  %v5398_v4 = vld [vmem:[%s8040_s1 + $0x28] ss:$16 sps:$4 sm:$0xff]   ;;  %156 = vmatprep.subr.bf16.mxu1 %v5395_v1  ;;  %v5399_v5 = vld [vmem:[%s8040_s1 + $0x4] ss:$16 sps:$4 sm:$0xff]   ;;  %v5401_v6 = vld [vmem:[%s8040_s1 + $0xc] ss:$16 sps:$4 sm:$0xff]  }
   0x3   :  { %116 = vmatpush1.bf16.msra.mxu0 %v5397_v3  ;;  %157 = vmatpush1.bf16.msra.mxu1 %v5398_v4  ;;  %v5403_v7 = vld [vmem:[%s8040_s1] ss:$16 sps:$4 sm:$0xff]   ;;  %v5404_v8 = vld [vmem:[%s8040_s1 + $0x8] ss:$16 sps:$4 sm:$0xff]   ;;  %v5407_v11 = vld [vmem:[%s8042_s3 + $0xe4] ss:$16 sps:$4 sm:$0xff]  }
   0x4   :  { %117 = vmatprep.subr.bf16.mxu0 %v5399_v5  ;;  %158 = vmatprep.subr.bf16.mxu1 %v5401_v6  ;;  %v28_v9 = vld [vmem:[%s8039_s0] sm:$0xf]  ;;  %v5410_v13 = vld [vmem:[%s8042_s3 + $0x2e4] ss:$16 sps:$4 sm:$0xff]  }
   0x5   :  { %v5405_v10 = vld [vmem:[%s8042_s3 + $0xe0] ss:$16 sps:$4 sm:$0xff]   ;;  %v5413_v14 = vld [vmem:[%s8042_s3 + $0xc4] ss:$16 sps:$4 sm:$0xff]  }
   0x6   :  { %v5408_v12 = vld [vmem:[%s8042_s3 + $0x2e0] ss:$16 sps:$4 sm:$0xff]   ;;  %v5416_v15 = vld [vmem:[%s8042_s3 + $0x2c4] ss:$16 sps:$4 sm:$0xff]  }
   0x7   :  { %118 = vmatpush1.bf16.msra.mxu0 %v5403_v7  ;;  %159 = vmatpush1.bf16.msra.mxu1 %v5404_v8  ;;  %v5411_v16 = vld [vmem:[%s8042_s3 + $0xc0] ss:$16 sps:$4 sm:$0xff]   ;;  %v5419_v18 = vld [vmem:[%s8042_s3 + $0xa4] ss:$16 sps:$4 sm:$0xff]  }
   0x8   :  { %983 = vmatprep.subr.bf16.mxu0 %v5407_v11  ;;  %1024 = vmatprep.subr.bf16.mxu1 %v5410_v13  ;;  %v5414_v17 = vld [vmem:[%s8042_s3 + $0x2c0] ss:$16 sps:$4 sm:$0xff]   ;;  %v5422_v19 = vld [vmem:[%s8042_s3 + $0x2a4] ss:$16 sps:$4 sm:$0xff]   ;;  %v5506_v11 = vld [vmem:[%s8042_s3 + $0x2ec] ss:$16 sps:$4 sm:$0xff]  }
   0x9   :  { %v5417_v20 = vld [vmem:[%s8042_s3 + $0xa0] ss:$16 sps:$4 sm:$0xff]   ;;  %v5425_v22 = vld [vmem:[%s8042_s3 + $0x84] ss:$16 sps:$4 sm:$0xff]  }
   0xa   :  { %4413 = vmatmul.mubr.msk.bf16.vlgmr.msra.gmra.mxu0 %vm99_vm0, %v28_v9  ;;  %4414 = vmatmul.mubr.msk.bf16.vlgmr.msra.gmra.mxu1 %vm99_vm0, %v28_v9  ;;  %v5420_v21 = vld [vmem:[%s8042_s3 + $0x2a0] ss:$16 sps:$4 sm:$0xff]   ;;  %v5428_v23 = vld [vmem:[%s8042_s3 + $0x284] ss:$16 sps:$4 sm:$0xff]  }
   0xb   :  { %984 = vmatpush1.bf16.msra.mxu0 %v5405_v10  ;;  %1025 = vmatpush1.bf16.msra.mxu1 %v5408_v12  ;;  %v5423_v24 = vld [vmem:[%s8042_s3 + $0x80] ss:$16 sps:$4 sm:$0xff]   ;;  %v5431_v26 = vld [vmem:[%s8042_s3 + $0x64] ss:$16 sps:$4 sm:$0xff]   ;;  %v5503_v10 = vld [vmem:[%s8042_s3 + $0xec] ss:$16 sps:$4 sm:$0xff]   ;;  %v39_v12 = vlaneseq }
   0xc   :  { %985 = vmatprep.subr.bf16.mxu0 %v5413_v14  ;;  %1026 = vmatprep.subr.bf16.mxu1 %v5416_v15  ;;  %v5426_v25 = vld [vmem:[%s8042_s3 + $0x280] ss:$16 sps:$4 sm:$0xff]   ;;  %v5434_v27 = vld [vmem:[%s8042_s3 + $0x264] ss:$16 sps:$4 sm:$0xff]  }
   0xd   :  { %v5429_v28 = vld [vmem:[%s8042_s3 + $0x60] ss:$16 sps:$4 sm:$0xff]   ;;  %v5437_v30 = vld [vmem:[%s8042_s3 + $0x44] ss:$16 sps:$4 sm:$0xff]   ;;  %v40_v13 = vshrl.u32 %v39_v12, 7 }
   0xe   :  { %v5432_v29 = vld [vmem:[%s8042_s3 + $0x260] ss:$16 sps:$4 sm:$0xff]   ;;  %v5440_v31 = vld [vmem:[%s8042_s3 + $0x244] ss:$16 sps:$4 sm:$0xff]   ;;  %v5552_v12 = vld [vmem:[%s8042_s3 + $0x3e8] ss:$16 sps:$4 sm:$0xff]  }
   0xf   :  { %986 = vmatpush1.bf16.msra.mxu0 %v5411_v16  ;;  %1027 = vmatpush1.bf16.msra.mxu1 %v5414_v17  ;;  %v5435_v32 = vld [vmem:[%s8042_s3 + $0x40] ss:$16 sps:$4 sm:$0xff]   ;;  %v5443_v34 = vld [vmem:[%s8042_s3 + $0x24] ss:$16 sps:$4 sm:$0xff]   ;;  %v6497_v15 = vsub.s32 0, %v40_v13  ;;  %v6499_v16 = vsub.s32 2, %v40_v13 }
  0x10   :  { %987 = vmatprep.subr.bf16.mxu0 %v5419_v18  ;;  %1028 = vmatprep.subr.bf16.mxu1 %v5422_v19  ;;  %v5438_v33 = vld [vmem:[%s8042_s3 + $0x240] ss:$16 sps:$4 sm:$0xff]   ;;  %v5446_v35 = vld [vmem:[%s8042_s3 + $0x224] ss:$16 sps:$4 sm:$0xff]   ;;  %v6501_v17 = vsub.s32 1, %v40_v13  ;;  %v6503_v18 = vsub.s32 3, %v40_v13 }
  0x11   :  { %v5441_v36 = vld [vmem:[%s8042_s3 + $0x20] ss:$16 sps:$4 sm:$0xff]   ;;  %v5449_v38 = vld [vmem:[%s8042_s3 + $0x4] ss:$16 sps:$4 sm:$0xff]   ;;  %v5557_v13 = vld [vmem:[%s8042_s3 + $0x1cc] ss:$16 sps:$4 sm:$0xff]  }
  0x12   :  { %v5444_v37 = vld [vmem:[%s8042_s3 + $0x220] ss:$16 sps:$4 sm:$0xff]   ;;  %v5452_v39 = vld [vmem:[%s8042_s3 + $0x204] ss:$16 sps:$4 sm:$0xff]  }
  0x13   :  { %988 = vmatpush1.bf16.msra.mxu0 %v5417_v20  ;;  %1029 = vmatpush1.bf16.msra.mxu1 %v5420_v21  ;;  %v5447_v40 = vld [vmem:[%s8042_s3] ss:$16 sps:$4 sm:$0xff]   ;;  %v5455_v42 = vld [vmem:[%s8042_s3 + $0x1e4] ss:$16 sps:$4 sm:$0xff]  }
  0x14   :  { %989 = vmatprep.subr.bf16.mxu0 %v5425_v22  ;;  %1030 = vmatprep.subr.bf16.mxu1 %v5428_v23  ;;  %v5450_v41 = vld [vmem:[%s8042_s3 + $0x200] ss:$16 sps:$4 sm:$0xff]   ;;  %v5458_v43 = vld [vmem:[%s8042_s3 + $0x3e4] ss:$16 sps:$4 sm:$0xff]  }
  0x15   :  { %v5453_v44 = vld [vmem:[%s8042_s3 + $0x1e0] ss:$16 sps:$4 sm:$0xff]   ;;  %v5461_v46 = vld [vmem:[%s8042_s3 + $0x1c4] ss:$16 sps:$4 sm:$0xff]  }
  0x16   :  { %v5456_v45 = vld [vmem:[%s8042_s3 + $0x3e0] ss:$16 sps:$4 sm:$0xff]   ;;  %v5464_v47 = vld [vmem:[%s8042_s3 + $0x3c4] ss:$16 sps:$4 sm:$0xff]  }
  0x17   :  { %990 = vmatpush1.bf16.msra.mxu0 %v5423_v24  ;;  %1031 = vmatpush1.bf16.msra.mxu1 %v5426_v25  ;;  %v5459_v48 = vld [vmem:[%s8042_s3 + $0x1c0] ss:$16 sps:$4 sm:$0xff]   ;;  %v5467_v50 = vld [vmem:[%s8042_s3 + $0x1a4] ss:$16 sps:$4 sm:$0xff]  }
  0x18   :  { %991 = vmatprep.subr.bf16.mxu0 %v5431_v26  ;;  %1032 = vmatprep.subr.bf16.mxu1 %v5434_v27  ;;  %v5462_v49 = vld [vmem:[%s8042_s3 + $0x3c0] ss:$16 sps:$4 sm:$0xff]   ;;  %v5470_v51 = vld [vmem:[%s8042_s3 + $0x3a4] ss:$16 sps:$4 sm:$0xff]  }
  0x19   :  { %v5465_v52 = vld [vmem:[%s8042_s3 + $0x1a0] ss:$16 sps:$4 sm:$0xff]   ;;  %v5473_v54 = vld [vmem:[%s8042_s3 + $0x184] ss:$16 sps:$4 sm:$0xff]  }
  0x1a   :  { %v5468_v53 = vld [vmem:[%s8042_s3 + $0x3a0] ss:$16 sps:$4 sm:$0xff]   ;;  %v5476_v55 = vld [vmem:[%s8042_s3 + $0x384] ss:$16 sps:$4 sm:$0xff]  }
  0x1b   :  { %992 = vmatpush1.bf16.msra.mxu0 %v5429_v28  ;;  %1033 = vmatpush1.bf16.msra.mxu1 %v5432_v29  ;;  %v5471_v56 = vld [vmem:[%s8042_s3 + $0x180] ss:$16 sps:$4 sm:$0xff]   ;;  %v5479_v58 = vld [vmem:[%s8042_s3 + $0x164] ss:$16 sps:$4 sm:$0xff]  }
  0x1c   :  { %993 = vmatprep.subr.bf16.mxu0 %v5437_v30  ;;  %1034 = vmatprep.subr.bf16.mxu1 %v5440_v31  ;;  %v5474_v57 = vld [vmem:[%s8042_s3 + $0x380] ss:$16 sps:$4 sm:$0xff]   ;;  %v5482_v59 = vld [vmem:[%s8042_s3 + $0x364] ss:$16 sps:$4 sm:$0xff]  }
  0x1d   :  { %v5477_v60 = vld [vmem:[%s8042_s3 + $0x160] ss:$16 sps:$4 sm:$0xff]   ;;  %v5485_v62 = vld [vmem:[%s8042_s3 + $0x144] ss:$16 sps:$4 sm:$0xff]  }
  0x1e   :  { %v5480_v61 = vld [vmem:[%s8042_s3 + $0x360] ss:$16 sps:$4 sm:$0xff]   ;;  %v5488_v63 = vld [vmem:[%s8042_s3 + $0x344] ss:$16 sps:$4 sm:$0xff]  }
  0x1f   :  { %994 = vmatpush1.bf16.msra.mxu0 %v5435_v32  ;;  %1035 = vmatpush1.bf16.msra.mxu1 %v5438_v33  ;;  %v5483_v0 = vld [vmem:[%s8042_s3 + $0x140] ss:$16 sps:$4 sm:$0xff]   ;;  %v5491_v2 = vld [vmem:[%s8042_s3 + $0x124] ss:$16 sps:$4 sm:$0xff]  }
  0x20   :  { %995 = vmatprep.subr.bf16.mxu0 %v5443_v34  ;;  %1036 = vmatprep.subr.bf16.mxu1 %v5446_v35  ;;  %v5486_v1 = vld [vmem:[%s8042_s3 + $0x340] ss:$16 sps:$4 sm:$0xff]   ;;  %v5494_v3 = vld [vmem:[%s8042_s3 + $0x324] ss:$16 sps:$4 sm:$0xff]  }
  0x21   :  { %v5489_v4 = vld [vmem:[%s8042_s3 + $0x120] ss:$16 sps:$4 sm:$0xff]   ;;  %v5497_v6 = vld [vmem:[%s8042_s3 + $0x104] ss:$16 sps:$4 sm:$0xff]  }
  0x22   :  { %v5492_v5 = vld [vmem:[%s8042_s3 + $0x320] ss:$16 sps:$4 sm:$0xff]   ;;  %v5500_v7 = vld [vmem:[%s8042_s3 + $0x304] ss:$16 sps:$4 sm:$0xff]  }
  0x23   :  { %996 = vmatpush1.bf16.msra.mxu0 %v5441_v36  ;;  %1037 = vmatpush1.bf16.msra.mxu1 %v5444_v37  ;;  %v5495_v8 = vld [vmem:[%s8042_s3 + $0x100] ss:$16 sps:$4 sm:$0xff]   ;;  %v5501_v37 = vld [vmem:[%s8042_s3 + $0xe8] ss:$16 sps:$4 sm:$0xff]  }
  0x24   :  { %997 = vmatprep.subr.bf16.mxu0 %v5449_v38  ;;  %1038 = vmatprep.subr.bf16.mxu1 %v5452_v39  ;;  %v5498_v9 = vld [vmem:[%s8042_s3 + $0x300] ss:$16 sps:$4 sm:$0xff]   ;;  %v5504_v38 = vld [vmem:[%s8042_s3 + $0x2e8] ss:$16 sps:$4 sm:$0xff]  }
  0x25   :  { %v37_v14 = vld [vmem:[%s8041_s2] sm:$0xf] }
  0x26   :  { %v42_v19 = vrot.slane %v37_v14, %v6497_v15  ;;  %v50_v20 = vrot.slane %v37_v14, %v6499_v16  ;;  %v46_v21 = vrot.slane %v37_v14, %v6501_v17  ;;  %v54_v22 = vrot.slane %v37_v14, %v6503_v18  ;;  %v5560_v14 = vld [vmem:[%s8042_s3 + $0x3cc] ss:$16 sps:$4 sm:$0xff]  }
  0x27   :  { %998 = vmatpush1.bf16.msra.mxu0 %v5447_v40  ;;  %1039 = vmatpush1.bf16.msra.mxu1 %v5450_v41 }
  0x28   :  { %999 = vmatprep.subr.bf16.mxu0 %v5455_v42  ;;  %1040 = vmatprep.subr.bf16.mxu1 %v5458_v43 }
  0x2b   :  { %1000 = vmatpush2.bf16.msra.mxu0 %v5453_v44  ;;  %1041 = vmatpush2.bf16.msra.mxu1 %v5456_v45  ;;  %v5509_v44 = vld [vmem:[%s8042_s3 + $0xcc] ss:$16 sps:$4 sm:$0xff]  }
  0x2c   :  { %1001 = vmatprep.subr.bf16.mxu0 %v5461_v46  ;;  %1042 = vmatprep.subr.bf16.mxu1 %v5464_v47  ;;  %v5512_v45 = vld [vmem:[%s8042_s3 + $0x2cc] ss:$16 sps:$4 sm:$0xff]   ;;  %v5507_v47 = vld [vmem:[%s8042_s3 + $0xc8] ss:$16 sps:$4 sm:$0xff]  }
  0x2f   :  { %1002 = vmatpush2.bf16.msra.mxu0 %v5459_v48  ;;  %1043 = vmatpush2.bf16.msra.mxu1 %v5462_v49  ;;  %v5510_v48 = vld [vmem:[%s8042_s3 + $0x2c8] ss:$16 sps:$4 sm:$0xff]   ;;  %v5515_v49 = vld [vmem:[%s8042_s3 + $0xac] ss:$16 sps:$4 sm:$0xff]  }
  0x30   :  { %1003 = vmatprep.subr.bf16.mxu0 %v5467_v50  ;;  %1044 = vmatprep.subr.bf16.mxu1 %v5470_v51  ;;  %v5518_v50 = vld [vmem:[%s8042_s3 + $0x2ac] ss:$16 sps:$4 sm:$0xff]   ;;  %v5513_v51 = vld [vmem:[%s8042_s3 + $0xa8] ss:$16 sps:$4 sm:$0xff]  }
  0x33   :  { %1004 = vmatpush2.bf16.msra.mxu0 %v5465_v52  ;;  %1045 = vmatpush2.bf16.msra.mxu1 %v5468_v53  ;;  %v5516_v52 = vld [vmem:[%s8042_s3 + $0x2a8] ss:$16 sps:$4 sm:$0xff]   ;;  %v5521_v53 = vld [vmem:[%s8042_s3 + $0x8c] ss:$16 sps:$4 sm:$0xff]  }
  0x34   :  { %1005 = vmatprep.subr.bf16.mxu0 %v5473_v54  ;;  %1046 = vmatprep.subr.bf16.mxu1 %v5476_v55  ;;  %v5524_v54 = vld [vmem:[%s8042_s3 + $0x28c] ss:$16 sps:$4 sm:$0xff]   ;;  %v5519_v55 = vld [vmem:[%s8042_s3 + $0x88] ss:$16 sps:$4 sm:$0xff]  }
  0x37   :  { %1006 = vmatpush2.bf16.msra.mxu0 %v5471_v56  ;;  %1047 = vmatpush2.bf16.msra.mxu1 %v5474_v57  ;;  %v5522_v56 = vld [vmem:[%s8042_s3 + $0x288] ss:$16 sps:$4 sm:$0xff]   ;;  %v5527_v57 = vld [vmem:[%s8042_s3 + $0x6c] ss:$16 sps:$4 sm:$0xff]  }
  0x38   :  { %1007 = vmatprep.subr.bf16.mxu0 %v5479_v58  ;;  %1048 = vmatprep.subr.bf16.mxu1 %v5482_v59  ;;  %v5530_v58 = vld [vmem:[%s8042_s3 + $0x26c] ss:$16 sps:$4 sm:$0xff]   ;;  %v5525_v59 = vld [vmem:[%s8042_s3 + $0x68] ss:$16 sps:$4 sm:$0xff]  }
  0x3b   :  { %1008 = vmatpush2.bf16.msra.mxu0 %v5477_v60  ;;  %1049 = vmatpush2.bf16.msra.mxu1 %v5480_v61  ;;  %v5528_v60 = vld [vmem:[%s8042_s3 + $0x268] ss:$16 sps:$4 sm:$0xff]   ;;  %v5533_v61 = vld [vmem:[%s8042_s3 + $0x4c] ss:$16 sps:$4 sm:$0xff]  }
  0x3c   :  { %1009 = vmatprep.subr.bf16.mxu0 %v5485_v62  ;;  %1050 = vmatprep.subr.bf16.mxu1 %v5488_v63  ;;  %v5536_v62 = vld [vmem:[%s8042_s3 + $0x24c] ss:$16 sps:$4 sm:$0xff]   ;;  %v5531_v63 = vld [vmem:[%s8042_s3 + $0x48] ss:$16 sps:$4 sm:$0xff]  }
  0x3f   :  { %1010 = vmatpush2.bf16.msra.mxu0 %v5483_v0  ;;  %1051 = vmatpush2.bf16.msra.mxu1 %v5486_v1  ;;  %v5534_v0 = vld [vmem:[%s8042_s3 + $0x248] ss:$16 sps:$4 sm:$0xff]   ;;  %v5539_v1 = vld [vmem:[%s8042_s3 + $0x2c] ss:$16 sps:$4 sm:$0xff]  }
  0x40   :  { %1011 = vmatprep.subr.bf16.mxu0 %v5491_v2  ;;  %1052 = vmatprep.subr.bf16.mxu1 %v5494_v3  ;;  %v5542_v2 = vld [vmem:[%s8042_s3 + $0x22c] ss:$16 sps:$4 sm:$0xff]   ;;  %v5537_v3 = vld [vmem:[%s8042_s3 + $0x28] ss:$16 sps:$4 sm:$0xff]  }
  0x43   :  { %1012 = vmatpush2.bf16.msra.mxu0 %v5489_v4  ;;  %1053 = vmatpush2.bf16.msra.mxu1 %v5492_v5  ;;  %v5540_v4 = vld [vmem:[%s8042_s3 + $0x228] ss:$16 sps:$4 sm:$0xff]   ;;  %v5545_v5 = vld [vmem:[%s8042_s3 + $0xc] ss:$16 sps:$4 sm:$0xff]  }
  0x44   :  { %1013 = vmatprep.subr.bf16.mxu0 %v5497_v6  ;;  %1054 = vmatprep.subr.bf16.mxu1 %v5500_v7  ;;  %v5548_v6 = vld [vmem:[%s8042_s3 + $0x20c] ss:$16 sps:$4 sm:$0xff]   ;;  %v5543_v7 = vld [vmem:[%s8042_s3 + $0x8] ss:$16 sps:$4 sm:$0xff]  }
  0x47   :  { %1014 = vmatpush2.bf16.msra.mxu0 %v5495_v8  ;;  %1055 = vmatpush2.bf16.msra.mxu1 %v5498_v9  ;;  %v5546_v8 = vld [vmem:[%s8042_s3 + $0x208] ss:$16 sps:$4 sm:$0xff]   ;;  %v5551_v9 = vld [vmem:[%s8042_s3 + $0x1ec] ss:$16 sps:$4 sm:$0xff]  }
  0x48   :  { %1065 = vmatprep.subr.bf16.mxu0 %v5503_v10  ;;  %1106 = vmatprep.subr.bf16.mxu1 %v5506_v11  ;;  %v5554_v10 = vld [vmem:[%s8042_s3 + $0x3ec] ss:$16 sps:$4 sm:$0xff]   ;;  %v5549_v11 = vld [vmem:[%s8042_s3 + $0x1e8] ss:$16 sps:$4 sm:$0xff]  }
  0xca   :  { %v137_v23 = vpop.f32.mrf.mxu0  ;;  %v178_v24 = vpop.f32.mrf.mxu1 }
  0xcb   :  { %v138_v25 = vadd.f32 %v137_v23, %v42_v19  ;;  %v179_v26 = vadd.f32 %v178_v24, %v50_v20  ;;  %v5555_v19 = vld [vmem:[%s8042_s3 + $0x1c8] ss:$16 sps:$4 sm:$0xff]  }
  0xcc   :  { %v139_v27 = vpop.f32.mrf.mxu0  ;;  %v180_v28 = vpop.f32.mrf.mxu1  ;;  %v5558_v20 = vld [vmem:[%s8042_s3 + $0x3c8] ss:$16 sps:$4 sm:$0xff]  }
  0xcd   :  { %v187_v29 = vmax.f32 %v179_v26, 0.0  ;;  %v140_v30 = vadd.f32 %v139_v27, %v46_v21  ;;  %v181_v31 = vadd.f32 %v180_v28, %v54_v22  ;;  %v185_v32 = vmax.f32 %v138_v25, 0.0  ;;  %v5563_v21 = vld [vmem:[%s8042_s3 + $0x1ac] ss:$16 sps:$4 sm:$0xff]   ;;  %v5561_v23 = vld [vmem:[%s8042_s3 + $0x1a8] ss:$16 sps:$4 sm:$0xff]  }
  0xce   :  { %v141_v33 = vpop.f32.mrf.mxu0  ;;  %v182_v34 = vpop.f32.mrf.mxu1  ;;  %v5566_v22 = vld [vmem:[%s8042_s3 + $0x3ac] ss:$16 sps:$4 sm:$0xff]   ;;  %v5564_v24 = vld [vmem:[%s8042_s3 + $0x3a8] ss:$16 sps:$4 sm:$0xff]  }
  0xcf   :  { %v186_v35 = vmax.f32 %v140_v30, 0.0  ;;  %v188_v36 = vmax.f32 %v181_v31, 0.0  ;;  %v6515_v39 = vpack.c.bf16 %v187_v29, %v187_v29  ;;  %v6523_v46 = vpack.c.bf16 %v185_v32, %v185_v32 }
  0xd0   :  { %v142_v40 = vpop.f32.mrf.mxu0  ;;  %v183_v41 = vpop.f32.mrf.mxu1 }
  0xd1   :  { %v190_v42 = vpack.c.bf16 %v186_v35, %v186_v35  ;;  %v192_v43 = vpack.c.bf16 %v188_v36, %v188_v36 }
  0xd3   :  { %1015 = vmatprep.mubr.bf16.mxu0 %v190_v42  ;;  %1056 = vmatprep.mubr.bf16.mxu1 %v192_v43 }
  0xd4   :  { %1016 = vmatmul.mubr.bf16.vlgmr.msra.gmra.mxu0 %v6523_v46  ;;  %1057 = vmatmul.mubr.bf16.vlgmr.msra.gmra.mxu1 %v6515_v39 }
  0xd5   :  { %1066 = vmatpush1.bf16.msra.mxu0 %v5501_v37  ;;  %1107 = vmatpush1.bf16.msra.mxu1 %v5504_v38 }
  0xd6   :  { %1097 = vmatprep.mubr.bf16.mxu0 %v190_v42  ;;  %1138 = vmatprep.mubr.bf16.mxu1 %v192_v43 }
  0xd7   :  { %1067 = vmatprep.subr.bf16.mxu0 %v5509_v44  ;;  %1108 = vmatprep.subr.bf16.mxu1 %v5512_v45 }
  0xd9   :  { %1068 = vmatpush1.bf16.msra.mxu0 %v5507_v47  ;;  %1109 = vmatpush1.bf16.msra.mxu1 %v5510_v48 }
  0xda   :  { %1069 = vmatprep.subr.bf16.mxu0 %v5515_v49  ;;  %1110 = vmatprep.subr.bf16.mxu1 %v5518_v50 }
  0xdd   :  { %1070 = vmatpush1.bf16.msra.mxu0 %v5513_v51  ;;  %1111 = vmatpush1.bf16.msra.mxu1 %v5516_v52 }
  0xde   :  { %1071 = vmatprep.subr.bf16.mxu0 %v5521_v53  ;;  %1112 = vmatprep.subr.bf16.mxu1 %v5524_v54 }
  0xe1   :  { %1072 = vmatpush1.bf16.msra.mxu0 %v5519_v55  ;;  %1113 = vmatpush1.bf16.msra.mxu1 %v5522_v56 }
  0xe2   :  { %1073 = vmatprep.subr.bf16.mxu0 %v5527_v57  ;;  %1114 = vmatprep.subr.bf16.mxu1 %v5530_v58 }
  0xe5   :  { %1074 = vmatpush1.bf16.msra.mxu0 %v5525_v59  ;;  %1115 = vmatpush1.bf16.msra.mxu1 %v5528_v60 }
  0xe6   :  { %1075 = vmatprep.subr.bf16.mxu0 %v5533_v61  ;;  %1116 = vmatprep.subr.bf16.mxu1 %v5536_v62 }
  0xe9   :  { %1076 = vmatpush1.bf16.msra.mxu0 %v5531_v63  ;;  %1117 = vmatpush1.bf16.msra.mxu1 %v5534_v0 }
  0xea   :  { %1077 = vmatprep.subr.bf16.mxu0 %v5539_v1  ;;  %1118 = vmatprep.subr.bf16.mxu1 %v5542_v2 }
  0xed   :  { %1078 = vmatpush1.bf16.msra.mxu0 %v5537_v3  ;;  %1119 = vmatpush1.bf16.msra.mxu1 %v5540_v4 }
  0xee   :  { %1079 = vmatprep.subr.bf16.mxu0 %v5545_v5  ;;  %1120 = vmatprep.subr.bf16.mxu1 %v5548_v6 }
  0xf1   :  { %1080 = vmatpush1.bf16.msra.mxu0 %v5543_v7  ;;  %1121 = vmatpush1.bf16.msra.mxu1 %v5546_v8 }
  0xf2   :  { %1081 = vmatprep.subr.bf16.mxu0 %v5551_v9  ;;  %1122 = vmatprep.subr.bf16.mxu1 %v5554_v10 }
  0xf5   :  { %1082 = vmatpush2.bf16.msra.mxu0 %v5549_v11  ;;  %1123 = vmatpush2.bf16.msra.mxu1 %v5552_v12 }
  0xf6   :  { %1083 = vmatprep.subr.bf16.mxu0 %v5557_v13  ;;  %1124 = vmatprep.subr.bf16.mxu1 %v5560_v14 }
  0xf9   :  { %1084 = vmatpush2.bf16.msra.mxu0 %v5555_v19  ;;  %1125 = vmatpush2.bf16.msra.mxu1 %v5558_v20 }
  0xfa   :  { %12 = vsyncpa [#allocation3], 0  ;;  %1085 = vmatprep.subr.bf16.mxu0 %v5563_v21  ;;  %1126 = vmatprep.subr.bf16.mxu1 %v5566_v22  ;;  %v5569_v25 = vld [vmem:[%s8042_s3 + $0x18c] ss:$16 sps:$4 sm:$0xff]   ;;  %v5567_v27 = vld [vmem:[%s8042_s3 + $0x188] ss:$16 sps:$4 sm:$0xff]  }
  0xfb   :  { %v5572_v26 = vld [vmem:[%s8042_s3 + $0x38c] ss:$16 sps:$4 sm:$0xff]   ;;  %v5570_v28 = vld [vmem:[%s8042_s3 + $0x388] ss:$16 sps:$4 sm:$0xff]   ;;  %v5599_v47 = vld [vmem:[%s8042_s3 + $0x4e4] ss:$16 sps:$4 sm:$0xff]  }
  0xfc   :  { %v5575_v29 = vld [vmem:[%s8042_s3 + $0x16c] ss:$16 sps:$4 sm:$0xff]   ;;  %v5573_v31 = vld [vmem:[%s8042_s3 + $0x168] ss:$16 sps:$4 sm:$0xff]   ;;  %v5597_v48 = vld [vmem:[%s8042_s3 + $0x4e0] ss:$16 sps:$4 sm:$0xff]  }
  0xfd   :  { %1086 = vmatpush2.bf16.msra.mxu0 %v5561_v23  ;;  %1127 = vmatpush2.bf16.msra.mxu1 %v5564_v24  ;;  %v5578_v30 = vld [vmem:[%s8042_s3 + $0x36c] ss:$16 sps:$4 sm:$0xff]   ;;  %v5576_v32 = vld [vmem:[%s8042_s3 + $0x368] ss:$16 sps:$4 sm:$0xff]   ;;  %v5602_v49 = vld [vmem:[%s8042_s3 + $0x4c4] ss:$16 sps:$4 sm:$0xff]  }
  0xfe   :  { %1087 = vmatprep.subr.bf16.mxu0 %v5569_v25  ;;  %1128 = vmatprep.subr.bf16.mxu1 %v5572_v26  ;;  %v5581_v33 = vld [vmem:[%s8042_s3 + $0x14c] ss:$16 sps:$4 sm:$0xff]   ;;  %v5579_v35 = vld [vmem:[%s8042_s3 + $0x148] ss:$16 sps:$4 sm:$0xff]   ;;  %v5600_v50 = vld [vmem:[%s8042_s3 + $0x4c0] ss:$16 sps:$4 sm:$0xff]  }
  0xff   :  { %v5584_v34 = vld [vmem:[%s8042_s3 + $0x34c] ss:$16 sps:$4 sm:$0xff]   ;;  %v5582_v36 = vld [vmem:[%s8042_s3 + $0x348] ss:$16 sps:$4 sm:$0xff]   ;;  %v5605_v51 = vld [vmem:[%s8042_s3 + $0x4a4] ss:$16 sps:$4 sm:$0xff]  }
 0x100   :  { %v5587_v37 = vld [vmem:[%s8042_s3 + $0x12c] ss:$16 sps:$4 sm:$0xff]   ;;  %v5585_v40 = vld [vmem:[%s8042_s3 + $0x128] ss:$16 sps:$4 sm:$0xff]   ;;  %v5603_v52 = vld [vmem:[%s8042_s3 + $0x4a0] ss:$16 sps:$4 sm:$0xff]  }
 0x101   :  { %1088 = vmatpush2.bf16.msra.mxu0 %v5567_v27  ;;  %1129 = vmatpush2.bf16.msra.mxu1 %v5570_v28  ;;  %v5590_v38 = vld [vmem:[%s8042_s3 + $0x32c] ss:$16 sps:$4 sm:$0xff]   ;;  %v5588_v41 = vld [vmem:[%s8042_s3 + $0x328] ss:$16 sps:$4 sm:$0xff]   ;;  %v5645_v53 = vld [vmem:[%s8042_s3 + $0x6e0] ss:$16 sps:$4 sm:$0xff]  }
 0x102   :  { %1089 = vmatprep.subr.bf16.mxu0 %v5575_v29  ;;  %1130 = vmatprep.subr.bf16.mxu1 %v5578_v30  ;;  %v5593_v42 = vld [vmem:[%s8042_s3 + $0x10c] ss:$16 sps:$4 sm:$0xff]   ;;  %v5591_v44 = vld [vmem:[%s8042_s3 + $0x108] ss:$16 sps:$4 sm:$0xff]   ;;  %v5647_v54 = vld [vmem:[%s8042_s3 + $0x6e4] ss:$16 sps:$4 sm:$0xff]  }
 0x103   :  { %v5596_v43 = vld [vmem:[%s8042_s3 + $0x30c] ss:$16 sps:$4 sm:$0xff]   ;;  %v5594_v45 = vld [vmem:[%s8042_s3 + $0x308] ss:$16 sps:$4 sm:$0xff]   ;;  %v5611_v55 = vld [vmem:[%s8042_s3 + $0x464] ss:$16 sps:$4 sm:$0xff]  }
 0x104   :  { %v5609_v56 = vld [vmem:[%s8042_s3 + $0x460] ss:$16 sps:$4 sm:$0xff]   ;;  %v5653_v58 = vld [vmem:[%s8042_s3 + $0x6c4] ss:$16 sps:$4 sm:$0xff]   ;;  %s6228_s2 = smov [#allocation2]  }
 0x105   :  { %1090 = vmatpush2.bf16.msra.mxu0 %v5573_v31  ;;  %1131 = vmatpush2.bf16.msra.mxu1 %v5576_v32  ;;  %v5651_v57 = vld [vmem:[%s8042_s3 + $0x6c0] ss:$16 sps:$4 sm:$0xff]   ;;  %v5614_v59 = vld [vmem:[%s8042_s3 + $0x444] ss:$16 sps:$4 sm:$0xff]   ;;  %s4397_s26 = sshll.u32 %s6228_s2, 4  ;;  %s4398_s26 = int_to_ptr.vmem [resolvable:$true] %s4397_s26 }
 0x106   :  { %1091 = vmatprep.subr.bf16.mxu0 %v5581_v33  ;;  %1132 = vmatprep.subr.bf16.mxu1 %v5584_v34  ;;  %v5612_v60 = vld [vmem:[%s8042_s3 + $0x440] ss:$16 sps:$4 sm:$0xff]   ;;  %v5659_v62 = vld [vmem:[%s8042_s3 + $0x6a4] ss:$16 sps:$4 sm:$0xff]   ;;  %s6205_s27 = scalar_lea.vmem %s4398_s26, 128  ;;  %p6210_p1 = scmp.lt.s32.totalorder %s4398_s26, %s4398_s26 }
 0x107   :  { %v5657_v61 = vld [vmem:[%s8042_s3 + $0x6a0] ss:$16 sps:$4 sm:$0xff]   ;;  %v5617_v63 = vld [vmem:[%s8042_s3 + $0x424] ss:$16 sps:$4 sm:$0xff]   ;;  %p6206_p0 = scmp.ne.s32.totalorder %s4398_s26, %s6205_s27  ;;  %p6211_p2 = scmp.lt.s32.totalorder %s6205_s27, %s6205_s27 }
 0x108   :  { %v5615_v0 = vld [vmem:[%s8042_s3 + $0x420] ss:$16 sps:$4 sm:$0xff]   ;;  %v5665_v2 = vld [vmem:[%s8042_s3 + $0x684] ss:$16 sps:$4 sm:$0xff]  }
 0x109   :  { %1092 = vmatpush2.bf16.msra.mxu0 %v5579_v35  ;;  %1133 = vmatpush2.bf16.msra.mxu1 %v5582_v36  ;;  %v5663_v1 = vld [vmem:[%s8042_s3 + $0x680] ss:$16 sps:$4 sm:$0xff]   ;;  %v5620_v3 = vld [vmem:[%s8042_s3 + $0x404] ss:$16 sps:$4 sm:$0xff]   ;;  %p6212_p3 = por %p6211_p2, %p6210_p1 }
 0x10a   :  { %1093 = vmatprep.subr.bf16.mxu0 %v5587_v37  ;;  %1134 = vmatprep.subr.bf16.mxu1 %v5590_v38  ;;  %v5618_v4 = vld [vmem:[%s8042_s3 + $0x400] ss:$16 sps:$4 sm:$0xff]   ;;  %v5671_v6 = vld [vmem:[%s8042_s3 + $0x664] ss:$16 sps:$4 sm:$0xff]  }
 0x10b   :  { %v5669_v5 = vld [vmem:[%s8042_s3 + $0x660] ss:$16 sps:$4 sm:$0xff]   ;;  %v5623_v7 = vld [vmem:[%s8042_s3 + $0x5e4] ss:$16 sps:$4 sm:$0xff]   ;;  %p6213_p4 = pnand %p6212_p3, %p6206_p0 }
 0x10c   :  { %v5621_v8 = vld [vmem:[%s8042_s3 + $0x5e0] ss:$16 sps:$4 sm:$0xff]   ;;  %v5677_v10 = vld [vmem:[%s8042_s3 + $0x644] ss:$16 sps:$4 sm:$0xff]  }
 0x10d   :  { %1094 = vmatpush2.bf16.msra.mxu0 %v5585_v40  ;;  %1135 = vmatpush2.bf16.msra.mxu1 %v5588_v41  ;;  %v5675_v9 = vld [vmem:[%s8042_s3 + $0x640] ss:$16 sps:$4 sm:$0xff]   ;;  %v5626_v11 = vld [vmem:[%s8042_s3 + $0x5c4] ss:$16 sps:$4 sm:$0xff]  }
 0x10e   :  { %1095 = vmatprep.subr.bf16.mxu0 %v5593_v42  ;;  %1136 = vmatprep.subr.bf16.mxu1 %v5596_v43  ;;  %v5624_v12 = vld [vmem:[%s8042_s3 + $0x5c0] ss:$16 sps:$4 sm:$0xff]   ;;  %v5683_v14 = vld [vmem:[%s8042_s3 + $0x624] ss:$16 sps:$4 sm:$0xff]  }
 0x10f   :  { %v5681_v13 = vld [vmem:[%s8042_s3 + $0x620] ss:$16 sps:$4 sm:$0xff]   ;;  %v5629_v19 = vld [vmem:[%s8042_s3 + $0x5a4] ss:$16 sps:$4 sm:$0xff]  }
 0x110   :  { %v5627_v20 = vld [vmem:[%s8042_s3 + $0x5a0] ss:$16 sps:$4 sm:$0xff]   ;;  %v5689_v22 = vld [vmem:[%s8042_s3 + $0x604] ss:$16 sps:$4 sm:$0xff]  }
 0x111   :  { %1096 = vmatpush2.bf16.msra.mxu0 %v5591_v44  ;;  %1137 = vmatpush2.bf16.msra.mxu1 %v5594_v45  ;;  %v5687_v21 = vld [vmem:[%s8042_s3 + $0x600] ss:$16 sps:$4 sm:$0xff]   ;;  %v5632_v23 = vld [vmem:[%s8042_s3 + $0x584] ss:$16 sps:$4 sm:$0xff]   ;;  %v5650_v44 = vld [vmem:[%s8042_s3 + $0x4ec] ss:$16 sps:$4 sm:$0xff]  }
 0x112   :  { %1947 = vmatprep.subr.bf16.mxu0 %v5599_v47  ;;  %1988 = vmatprep.subr.bf16.mxu1 %v5647_v54  ;;  %v5630_v24 = vld [vmem:[%s8042_s3 + $0x580] ss:$16 sps:$4 sm:$0xff]   ;;  %v5695_v26 = vld [vmem:[%s8042_s3 + $0x7e4] ss:$16 sps:$4 sm:$0xff]  }
 0x113   :  { %v5693_v25 = vld [vmem:[%s8042_s3 + $0x7e0] ss:$16 sps:$4 sm:$0xff]   ;;  %v5635_v27 = vld [vmem:[%s8042_s3 + $0x564] ss:$16 sps:$4 sm:$0xff]  }
 0x114   :  { %1098 = vmatmul.mubr.bf16.vlgmr.msra.gmra.mxu0 %v6523_v46  ;;  %1139 = vmatmul.mubr.bf16.vlgmr.msra.gmra.mxu1 %v6515_v39  ;;  %v5608_v39 = vld [vmem:[%s8042_s3 + $0x484] ss:$16 sps:$4 sm:$0xff]   ;;  %v5606_v46 = vld [vmem:[%s8042_s3 + $0x480] ss:$16 sps:$4 sm:$0xff]  }
 0x115   :  { %1948 = vmatpush1.bf16.msra.mxu0 %v5597_v48  ;;  %1989 = vmatpush1.bf16.msra.mxu1 %v5645_v53  ;;  %v5633_v28 = vld [vmem:[%s8042_s3 + $0x560] ss:$16 sps:$4 sm:$0xff]   ;;  %v5701_v30 = vld [vmem:[%s8042_s3 + $0x7c4] ss:$16 sps:$4 sm:$0xff]  }
 0x116   :  { %1949 = vmatprep.subr.bf16.mxu0 %v5602_v49  ;;  %1990 = vmatprep.subr.bf16.mxu1 %v5653_v58  ;;  %v5699_v29 = vld [vmem:[%s8042_s3 + $0x7c0] ss:$16 sps:$4 sm:$0xff]   ;;  %v5638_v31 = vld [vmem:[%s8042_s3 + $0x544] ss:$16 sps:$4 sm:$0xff]  }
 0x117   :  { %v5636_v32 = vld [vmem:[%s8042_s3 + $0x540] ss:$16 sps:$4 sm:$0xff]   ;;  %v5707_v34 = vld [vmem:[%s8042_s3 + $0x7a4] ss:$16 sps:$4 sm:$0xff]  }
 0x118   :  { %v5705_v33 = vld [vmem:[%s8042_s3 + $0x7a0] ss:$16 sps:$4 sm:$0xff]   ;;  %v5641_v35 = vld [vmem:[%s8042_s3 + $0x524] ss:$16 sps:$4 sm:$0xff]  }
 0x119   :  { %1950 = vmatpush1.bf16.msra.mxu0 %v5600_v50  ;;  %1991 = vmatpush1.bf16.msra.mxu1 %v5651_v57  ;;  %v5639_v36 = vld [vmem:[%s8042_s3 + $0x520] ss:$16 sps:$4 sm:$0xff]   ;;  %v5713_v38 = vld [vmem:[%s8042_s3 + $0x784] ss:$16 sps:$4 sm:$0xff]  }
 0x11a   :  { %1951 = vmatprep.subr.bf16.mxu0 %v5605_v51  ;;  %1992 = vmatprep.subr.bf16.mxu1 %v5659_v62  ;;  %v5711_v37 = vld [vmem:[%s8042_s3 + $0x780] ss:$16 sps:$4 sm:$0xff]   ;;  %v5644_v40 = vld [vmem:[%s8042_s3 + $0x504] ss:$16 sps:$4 sm:$0xff]  }
 0x11b   :  { %v5642_v41 = vld [vmem:[%s8042_s3 + $0x500] ss:$16 sps:$4 sm:$0xff]   ;;  %v5719_v43 = vld [vmem:[%s8042_s3 + $0x764] ss:$16 sps:$4 sm:$0xff]  }
 0x11c   :  { %v5717_v42 = vld [vmem:[%s8042_s3 + $0x760] ss:$16 sps:$4 sm:$0xff]   ;;  %v5725_v47 = vld [vmem:[%s8042_s3 + $0x744] ss:$16 sps:$4 sm:$0xff]  }
 0x11d   :  { %1952 = vmatpush1.bf16.msra.mxu0 %v5603_v52  ;;  %1993 = vmatpush1.bf16.msra.mxu1 %v5657_v61  ;;  %v5723_v45 = vld [vmem:[%s8042_s3 + $0x740] ss:$16 sps:$4 sm:$0xff]   ;;  %v5731_v48 = vld [vmem:[%s8042_s3 + $0x724] ss:$16 sps:$4 sm:$0xff]   ;;  %v5743_v52 = vld [vmem:[%s8042_s3 + $0x6ec] ss:$16 sps:$4 sm:$0xff]  }
 0x11e   :  { %1953 = vmatprep.subr.bf16.mxu0 %v5608_v39  ;;  %1994 = vmatprep.subr.bf16.mxu1 %v5665_v2  ;;  %v5729_v49 = vld [vmem:[%s8042_s3 + $0x720] ss:$16 sps:$4 sm:$0xff]   ;;  %v5737_v50 = vld [vmem:[%s8042_s3 + $0x704] ss:$16 sps:$4 sm:$0xff]  }
 0x11f   :  { %v5735_v51 = vld [vmem:[%s8042_s3 + $0x700] ss:$16 sps:$4 sm:$0xff]  }
 0x120   :  { %v6904_v39 = vld [vmem:[%s8043_s4] sm:$0xf] }
 0x121   :  { %1954 = vmatpush1.bf16.msra.mxu0 %v5606_v46  ;;  %1995 = vmatpush1.bf16.msra.mxu1 %v5663_v1  ;;  %v326_v46 = vrot.slane %v6904_v39, %v6497_v15  ;;  %v330_v53 = vrot.slane %v6904_v39, %v6501_v17 }
 0x122   :  { %1955 = vmatprep.subr.bf16.mxu0 %v5611_v55  ;;  %1996 = vmatprep.subr.bf16.mxu1 %v5671_v6 }
 0x125   :  { %1956 = vmatpush1.bf16.msra.mxu0 %v5609_v56  ;;  %1997 = vmatpush1.bf16.msra.mxu1 %v5669_v5  ;;  %v5648_v5 = vld [vmem:[%s8042_s3 + $0x4e8] ss:$16 sps:$4 sm:$0xff]  }
 0x126   :  { %1957 = vmatprep.subr.bf16.mxu0 %v5614_v59  ;;  %1998 = vmatprep.subr.bf16.mxu1 %v5677_v10  ;;  %v5660_v10 = vld [vmem:[%s8042_s3 + $0x4a8] ss:$16 sps:$4 sm:$0xff]  }
 0x129   :  { %1958 = vmatpush1.bf16.msra.mxu0 %v5612_v60  ;;  %1999 = vmatpush1.bf16.msra.mxu1 %v5675_v9  ;;  %v5662_v9 = vld [vmem:[%s8042_s3 + $0x4ac] ss:$16 sps:$4 sm:$0xff]  }
 0x12a   :  { %1959 = vmatprep.subr.bf16.mxu0 %v5617_v63  ;;  %2000 = vmatprep.subr.bf16.mxu1 %v5683_v14  ;;  %v5672_v14 = vld [vmem:[%s8042_s3 + $0x468] ss:$16 sps:$4 sm:$0xff]  }
 0x12d   :  { %1960 = vmatpush1.bf16.msra.mxu0 %v5615_v0  ;;  %2001 = vmatpush1.bf16.msra.mxu1 %v5681_v13  ;;  %v5674_v13 = vld [vmem:[%s8042_s3 + $0x46c] ss:$16 sps:$4 sm:$0xff]  }
 0x12e   :  { %1961 = vmatprep.subr.bf16.mxu0 %v5620_v3  ;;  %2002 = vmatprep.subr.bf16.mxu1 %v5689_v22  ;;  %v5684_v22 = vld [vmem:[%s8042_s3 + $0x428] ss:$16 sps:$4 sm:$0xff]  }
 0x131   :  { %1962 = vmatpush1.bf16.msra.mxu0 %v5618_v4  ;;  %2003 = vmatpush1.bf16.msra.mxu1 %v5687_v21  ;;  %v5686_v21 = vld [vmem:[%s8042_s3 + $0x42c] ss:$16 sps:$4 sm:$0xff]  }
 0x132   :  { %1963 = vmatprep.subr.bf16.mxu0 %v5623_v7  ;;  %2004 = vmatprep.subr.bf16.mxu1 %v5695_v26  ;;  %v5656_v7 = vld [vmem:[%s8042_s3 + $0x4cc] ss:$16 sps:$4 sm:$0xff]   ;;  %v5696_v26 = vld [vmem:[%s8042_s3 + $0x5e8] ss:$16 sps:$4 sm:$0xff]  }
 0x135   :  { %1964 = vmatpush2.bf16.msra.mxu0 %v5621_v8  ;;  %2005 = vmatpush2.bf16.msra.mxu1 %v5693_v25  ;;  %v5654_v8 = vld [vmem:[%s8042_s3 + $0x4c8] ss:$16 sps:$4 sm:$0xff]   ;;  %v5698_v25 = vld [vmem:[%s8042_s3 + $0x5ec] ss:$16 sps:$4 sm:$0xff]  }
 0x136   :  { %1965 = vmatprep.subr.bf16.mxu0 %v5626_v11  ;;  %2006 = vmatprep.subr.bf16.mxu1 %v5701_v30  ;;  %v5668_v11 = vld [vmem:[%s8042_s3 + $0x48c] ss:$16 sps:$4 sm:$0xff]   ;;  %v5708_v30 = vld [vmem:[%s8042_s3 + $0x5a8] ss:$16 sps:$4 sm:$0xff]  }
 0x139   :  { %1966 = vmatpush2.bf16.msra.mxu0 %v5624_v12  ;;  %2007 = vmatpush2.bf16.msra.mxu1 %v5699_v29  ;;  %v5666_v12 = vld [vmem:[%s8042_s3 + $0x488] ss:$16 sps:$4 sm:$0xff]   ;;  %v5710_v29 = vld [vmem:[%s8042_s3 + $0x5ac] ss:$16 sps:$4 sm:$0xff]  }
 0x13a   :  { %1967 = vmatprep.subr.bf16.mxu0 %v5629_v19  ;;  %2008 = vmatprep.subr.bf16.mxu1 %v5707_v34  ;;  %v5680_v19 = vld [vmem:[%s8042_s3 + $0x44c] ss:$16 sps:$4 sm:$0xff]   ;;  %v5720_v34 = vld [vmem:[%s8042_s3 + $0x568] ss:$16 sps:$4 sm:$0xff]  }
 0x13d   :  { %1968 = vmatpush2.bf16.msra.mxu0 %v5627_v20  ;;  %2009 = vmatpush2.bf16.msra.mxu1 %v5705_v33  ;;  %v5678_v20 = vld [vmem:[%s8042_s3 + $0x448] ss:$16 sps:$4 sm:$0xff]   ;;  %v5722_v33 = vld [vmem:[%s8042_s3 + $0x56c] ss:$16 sps:$4 sm:$0xff]  }
 0x13e   :  { %1969 = vmatprep.subr.bf16.mxu0 %v5632_v23  ;;  %2010 = vmatprep.subr.bf16.mxu1 %v5713_v38  ;;  %v5692_v23 = vld [vmem:[%s8042_s3 + $0x40c] ss:$16 sps:$4 sm:$0xff]  }
 0x13f   :  { %v5734_v38 = vld [vmem:[%s8042_s3 + $0x52c] ss:$16 sps:$4 sm:$0xff]  }
 0x141   :  { %1970 = vmatpush2.bf16.msra.mxu0 %v5630_v24  ;;  %2011 = vmatpush2.bf16.msra.mxu1 %v5711_v37  ;;  %v5690_v24 = vld [vmem:[%s8042_s3 + $0x408] ss:$16 sps:$4 sm:$0xff]  }
 0x142   :  { %1971 = vmatprep.subr.bf16.mxu0 %v5635_v27  ;;  %2012 = vmatprep.subr.bf16.mxu1 %v5719_v43  ;;  %v5704_v27 = vld [vmem:[%s8042_s3 + $0x5cc] ss:$16 sps:$4 sm:$0xff]   ;;  %v5726_v37 = vld [vmem:[%s8042_s3 + $0x548] ss:$16 sps:$4 sm:$0xff]  }
 0x145   :  { %1972 = vmatpush2.bf16.msra.mxu0 %v5633_v28  ;;  %2013 = vmatpush2.bf16.msra.mxu1 %v5717_v42  ;;  %v5702_v28 = vld [vmem:[%s8042_s3 + $0x5c8] ss:$16 sps:$4 sm:$0xff]  }
 0x146   :  { %1973 = vmatprep.subr.bf16.mxu0 %v5638_v31  ;;  %2014 = vmatprep.subr.bf16.mxu1 %v5725_v47  ;;  %v5716_v31 = vld [vmem:[%s8042_s3 + $0x58c] ss:$16 sps:$4 sm:$0xff]  }
 0x149   :  { %1974 = vmatpush2.bf16.msra.mxu0 %v5636_v32  ;;  %2015 = vmatpush2.bf16.msra.mxu1 %v5723_v45  ;;  %v5714_v32 = vld [vmem:[%s8042_s3 + $0x588] ss:$16 sps:$4 sm:$0xff]  }
 0x14a   :  { %1975 = vmatprep.subr.bf16.mxu0 %v5641_v35  ;;  %2016 = vmatprep.subr.bf16.mxu1 %v5731_v48  ;;  %v5728_v35 = vld [vmem:[%s8042_s3 + $0x54c] ss:$16 sps:$4 sm:$0xff]  }
 0x14b   :  { %v5740_v48 = vld [vmem:[%s8042_s3 + $0x50c] ss:$16 sps:$4 sm:$0xff]  }
 0x14d   :  { %1976 = vmatpush2.bf16.msra.mxu0 %v5639_v36  ;;  %2017 = vmatpush2.bf16.msra.mxu1 %v5729_v49  ;;  %v334_v36 = vrot.slane %v6904_v39, %v6499_v16 }
 0x14e   :  { %1977 = vmatprep.subr.bf16.mxu0 %v5644_v40  ;;  %2018 = vmatprep.subr.bf16.mxu1 %v5737_v50  ;;  %v338_v40 = vrot.slane %v6904_v39, %v6503_v18 }
 0x151   :  { %1978 = vmatpush2.bf16.msra.mxu0 %v5642_v41  ;;  %2019 = vmatpush2.bf16.msra.mxu1 %v5735_v51 }
 0x152   :  { %2029 = vmatprep.subr.bf16.mxu0 %v5650_v44  ;;  %2070 = vmatprep.subr.bf16.mxu1 %v5743_v52  ;;  %v5732_v44 = vld [vmem:[%s8042_s3 + $0x528] ss:$16 sps:$4 sm:$0xff]  }
 0x194   :  { %v1017_v54 = vpop.f32.mrf.mxu0  ;;  %v1058_v55 = vpop.f32.mrf.mxu1 }
 0x195   :  { %v1018_v56 = vadd.f32 %v1017_v54, %v326_v46  ;;  %v5738_v46 = vld [vmem:[%s8042_s3 + $0x508] ss:$16 sps:$4 sm:$0xff]  }
 0x196   :  { %v1019_v57 = vpop.f32.mrf.mxu0  ;;  %v1060_v58 = vpop.f32.mrf.mxu1 }
 0x197   :  { %v1059_v59 = vadd.f32 %v1058_v55, %v1018_v56  ;;  %v1020_v60 = vadd.f32 %v1019_v57, %v330_v53 }
 0x198   :  { %v1021_v61 = vpop.f32.mrf.mxu0  ;;  %v1062_v62 = vpop.f32.mrf.mxu1 }
 0x199   :  { %v1061_v63 = vadd.f32 %v1060_v58, %v1020_v60  ;;  %v1147_v0 = vmax.f32 %v1059_v59, 0.0  ;;  %v5741_v58 = vld [vmem:[%s8042_s3 + $0x6e8] ss:$16 sps:$4 sm:$0xff]   ;;  %v5746_v60 = vld [vmem:[%s8042_s3 + $0x6cc] ss:$16 sps:$4 sm:$0xff]  }
 0x19a   :  { %v1022_v1 = vpop.f32.mrf.mxu0  ;;  %v1063_v2 = vpop.f32.mrf.mxu1  ;;  %v5744_v61 = vld [vmem:[%s8042_s3 + $0x6c8] ss:$16 sps:$4 sm:$0xff]   ;;  %v5749_v62 = vld [vmem:[%s8042_s3 + $0x6ac] ss:$16 sps:$4 sm:$0xff]  }
 0x19b   :  { %v1148_v3 = vmax.f32 %v1061_v63, 0.0  ;;  %v6913_v6 = vpack.c.bf16 %v1147_v0, %v1147_v0  ;;  %v5747_v63 = vld [vmem:[%s8042_s3 + $0x6a8] ss:$16 sps:$4 sm:$0xff]   ;;  %v5752_v0 = vld [vmem:[%s8042_s3 + $0x68c] ss:$16 sps:$4 sm:$0xff]  }
 0x19c   :  { %v5789_v1 = vld [vmem:[%s8042_s3 + $0x8e0] ss:$16 sps:$4 sm:$0xff]   ;;  %v5791_v2 = vld [vmem:[%s8042_s3 + $0x8e4] ss:$16 sps:$4 sm:$0xff]  }
 0x19d   :  { %v1152_v4 = vpack.c.bf16 %v1148_v3, %v1148_v3  ;;  %v5794_v3 = vld [vmem:[%s8042_s3 + $0x8c4] ss:$16 sps:$4 sm:$0xff]  }
 0x19f   :  { %1979 = vmatprep.mubr.bf16.mxu0 %v1152_v4 }
 0x1a0   :  { %1980 = vmatmul.mubr.bf16.vlgmr.msra.gmra.mxu0 %v6913_v6 }
 0x1a1   :  { %2030 = vmatpush1.bf16.msra.mxu0 %v5648_v5  ;;  %2061 = vmatprep.mubr.bf16.mxu0 %v1152_v4  ;;  %v5750_v4 = vld [vmem:[%s8042_s3 + $0x688] ss:$16 sps:$4 sm:$0xff]   ;;  %v5792_v5 = vld [vmem:[%s8042_s3 + $0x8c0] ss:$16 sps:$4 sm:$0xff]  }
 0x1a2   :  { %2031 = vmatprep.subr.bf16.mxu0 %v5656_v7  ;;  %v5797_v7 = vld [vmem:[%s8042_s3 + $0x8a4] ss:$16 sps:$4 sm:$0xff]  }
 0x1a5   :  { %2032 = vmatpush1.bf16.msra.mxu0 %v5654_v8  ;;  %v5753_v8 = vld [vmem:[%s8042_s3 + $0x668] ss:$16 sps:$4 sm:$0xff]  }
 0x1a6   :  { %2033 = vmatprep.subr.bf16.mxu0 %v5662_v9  ;;  %v5795_v9 = vld [vmem:[%s8042_s3 + $0x8a0] ss:$16 sps:$4 sm:$0xff]  }
 0x1a9   :  { %2034 = vmatpush1.bf16.msra.mxu0 %v5660_v10  ;;  %v5758_v10 = vld [vmem:[%s8042_s3 + $0x64c] ss:$16 sps:$4 sm:$0xff]  }
 0x1aa   :  { %2035 = vmatprep.subr.bf16.mxu0 %v5668_v11  ;;  %v5800_v11 = vld [vmem:[%s8042_s3 + $0x884] ss:$16 sps:$4 sm:$0xff]  }
 0x1ad   :  { %2036 = vmatpush1.bf16.msra.mxu0 %v5666_v12  ;;  %v5756_v12 = vld [vmem:[%s8042_s3 + $0x648] ss:$16 sps:$4 sm:$0xff]  }
 0x1ae   :  { %2037 = vmatprep.subr.bf16.mxu0 %v5674_v13  ;;  %v5798_v13 = vld [vmem:[%s8042_s3 + $0x880] ss:$16 sps:$4 sm:$0xff]  }
 0x1b1   :  { %2038 = vmatpush1.bf16.msra.mxu0 %v5672_v14  ;;  %v5761_v14 = vld [vmem:[%s8042_s3 + $0x62c] ss:$16 sps:$4 sm:$0xff]  }
 0x1b2   :  { %2039 = vmatprep.subr.bf16.mxu0 %v5680_v19  ;;  %v5803_v19 = vld [vmem:[%s8042_s3 + $0x864] ss:$16 sps:$4 sm:$0xff]  }
 0x1b5   :  { %2040 = vmatpush1.bf16.msra.mxu0 %v5678_v20  ;;  %v5759_v20 = vld [vmem:[%s8042_s3 + $0x628] ss:$16 sps:$4 sm:$0xff]  }
 0x1b6   :  { %2041 = vmatprep.subr.bf16.mxu0 %v5686_v21  ;;  %v5801_v21 = vld [vmem:[%s8042_s3 + $0x860] ss:$16 sps:$4 sm:$0xff]  }
 0x1b9   :  { %2042 = vmatpush1.bf16.msra.mxu0 %v5684_v22  ;;  %v5764_v22 = vld [vmem:[%s8042_s3 + $0x60c] ss:$16 sps:$4 sm:$0xff]  }
 0x1ba   :  { %2043 = vmatprep.subr.bf16.mxu0 %v5692_v23  ;;  %v5806_v23 = vld [vmem:[%s8042_s3 + $0x844] ss:$16 sps:$4 sm:$0xff]  }
 0x1bd   :  { %2044 = vmatpush1.bf16.msra.mxu0 %v5690_v24  ;;  %v5762_v24 = vld [vmem:[%s8042_s3 + $0x608] ss:$16 sps:$4 sm:$0xff]  }
 0x1be   :  { %2045 = vmatprep.subr.bf16.mxu0 %v5698_v25  ;;  %v5804_v25 = vld [vmem:[%s8042_s3 + $0x840] ss:$16 sps:$4 sm:$0xff]  }
 0x1c1   :  { %2046 = vmatpush2.bf16.msra.mxu0 %v5696_v26  ;;  %v5767_v26 = vld [vmem:[%s8042_s3 + $0x7ec] ss:$16 sps:$4 sm:$0xff]  }
 0x1c2   :  { %2047 = vmatprep.subr.bf16.mxu0 %v5704_v27  ;;  %v5809_v27 = vld [vmem:[%s8042_s3 + $0x824] ss:$16 sps:$4 sm:$0xff]  }
 0x1c5   :  { %2048 = vmatpush2.bf16.msra.mxu0 %v5702_v28  ;;  %v5765_v28 = vld [vmem:[%s8042_s3 + $0x7e8] ss:$16 sps:$4 sm:$0xff]  }
 0x1c6   :  { %2049 = vmatprep.subr.bf16.mxu0 %v5710_v29  ;;  %v5807_v29 = vld [vmem:[%s8042_s3 + $0x820] ss:$16 sps:$4 sm:$0xff]  }
 0x1c9   :  { %2050 = vmatpush2.bf16.msra.mxu0 %v5708_v30  ;;  %v5770_v30 = vld [vmem:[%s8042_s3 + $0x7cc] ss:$16 sps:$4 sm:$0xff]  }
 0x1ca   :  { %2051 = vmatprep.subr.bf16.mxu0 %v5716_v31  ;;  %v5812_v31 = vld [vmem:[%s8042_s3 + $0x804] ss:$16 sps:$4 sm:$0xff]  }
 0x1cd   :  { %2052 = vmatpush2.bf16.msra.mxu0 %v5714_v32  ;;  %v5768_v32 = vld [vmem:[%s8042_s3 + $0x7c8] ss:$16 sps:$4 sm:$0xff]  }
 0x1ce   :  { %2053 = vmatprep.subr.bf16.mxu0 %v5722_v33  ;;  %v5810_v33 = vld [vmem:[%s8042_s3 + $0x800] ss:$16 sps:$4 sm:$0xff]  }
 0x1d1   :  { %2054 = vmatpush2.bf16.msra.mxu0 %v5720_v34  ;;  %v5773_v34 = vld [vmem:[%s8042_s3 + $0x7ac] ss:$16 sps:$4 sm:$0xff]  }
 0x1d2   :  { %2055 = vmatprep.subr.bf16.mxu0 %v5728_v35  ;;  %v5815_v35 = vld [vmem:[%s8042_s3 + $0x9e4] ss:$16 sps:$4 sm:$0xff]  }
 0x1d4   :  { %v1099_v41 = vpop.f32.mrf.mxu0  ;;  %v1140_v42 = vpop.f32.mrf.mxu1 }
 0x1d5   :  { %v1100_v43 = vadd.f32 %v1099_v41, %v334_v36  ;;  %2056 = vmatpush2.bf16.msra.mxu0 %v5726_v37  ;;  %v5771_v36 = vld [vmem:[%s8042_s3 + $0x7a8] ss:$16 sps:$4 sm:$0xff]   ;;  %v5813_v37 = vld [vmem:[%s8042_s3 + $0x9e0] ss:$16 sps:$4 sm:$0xff]  }
 0x1d6   :  { %v1101_v45 = vpop.f32.mrf.mxu0  ;;  %v1142_v47 = vpop.f32.mrf.mxu1  ;;  %2057 = vmatprep.subr.bf16.mxu0 %v5734_v38  ;;  %v5776_v38 = vld [vmem:[%s8042_s3 + $0x78c] ss:$16 sps:$4 sm:$0xff]   ;;  %v5774_v41 = vld [vmem:[%s8042_s3 + $0x788] ss:$16 sps:$4 sm:$0xff]  }
 0x1d7   :  { %v1141_v49 = vadd.f32 %v1140_v42, %v1100_v43  ;;  %v1102_v50 = vadd.f32 %v1101_v45, %v338_v40  ;;  %v5818_v40 = vld [vmem:[%s8042_s3 + $0x9c4] ss:$16 sps:$4 sm:$0xff]   ;;  %v5816_v42 = vld [vmem:[%s8042_s3 + $0x9c0] ss:$16 sps:$4 sm:$0xff]   ;;  %v5779_v43 = vld [vmem:[%s8042_s3 + $0x76c] ss:$16 sps:$4 sm:$0xff]  }
 0x1d8   :  { %v1103_v51 = vpop.f32.mrf.mxu0  ;;  %v1144_v52 = vpop.f32.mrf.mxu1  ;;  %v5777_v45 = vld [vmem:[%s8042_s3 + $0x768] ss:$16 sps:$4 sm:$0xff]  }
 0x1d9   :  { %v1143_v39 = vadd.f32 %v1142_v47, %v1102_v50  ;;  %2058 = vmatpush2.bf16.msra.mxu0 %v5732_v44  ;;  %v1149_v53 = vmax.f32 %v1141_v49, 0.0  ;;  %v5821_v44 = vld [vmem:[%s8042_s3 + $0x9a4] ss:$16 sps:$4 sm:$0xff]   ;;  %v5819_v47 = vld [vmem:[%s8042_s3 + $0x9a0] ss:$16 sps:$4 sm:$0xff]  }
 0x1da   :  { %v1104_v54 = vpop.f32.mrf.mxu0  ;;  %v1145_v55 = vpop.f32.mrf.mxu1  ;;  %2059 = vmatprep.subr.bf16.mxu0 %v5740_v48  ;;  %v5782_v48 = vld [vmem:[%s8042_s3 + $0x74c] ss:$16 sps:$4 sm:$0xff]   ;;  %v5824_v49 = vld [vmem:[%s8042_s3 + $0x984] ss:$16 sps:$4 sm:$0xff]   ;;  %v5780_v50 = vld [vmem:[%s8042_s3 + $0x748] ss:$16 sps:$4 sm:$0xff]  }
 0x1db   :  { %v1150_v56 = vmax.f32 %v1143_v39, 0.0  ;;  %v7013_v59 = vpack.c.bf16 %v1149_v53, %v1149_v53  ;;  %v5822_v51 = vld [vmem:[%s8042_s3 + $0x980] ss:$16 sps:$4 sm:$0xff]   ;;  %v5785_v52 = vld [vmem:[%s8042_s3 + $0x72c] ss:$16 sps:$4 sm:$0xff]  }
 0x1dc   :  { %v5827_v39 = vld [vmem:[%s8042_s3 + $0x964] ss:$16 sps:$4 sm:$0xff]   ;;  %v5825_v53 = vld [vmem:[%s8042_s3 + $0x960] ss:$16 sps:$4 sm:$0xff]   ;;  %v5788_v54 = vld [vmem:[%s8042_s3 + $0x70c] ss:$16 sps:$4 sm:$0xff]  }
 0x1dd   :  { %v1154_v57 = vpack.c.bf16 %v1150_v56, %v1150_v56  ;;  %2060 = vmatpush2.bf16.msra.mxu0 %v5738_v46  ;;  %v5783_v46 = vld [vmem:[%s8042_s3 + $0x728] ss:$16 sps:$4 sm:$0xff]   ;;  %v5830_v55 = vld [vmem:[%s8042_s3 + $0x944] ss:$16 sps:$4 sm:$0xff]  }
 0x1de   :  { %2911 = vmatprep.subr.bf16.mxu0 %v5791_v2  ;;  %v5786_v56 = vld [vmem:[%s8042_s3 + $0x708] ss:$16 sps:$4 sm:$0xff]   ;;  %v5845_v2 = vld [vmem:[%s8042_s3 + $0xac4] ss:$16 sps:$4 sm:$0xff]  }
 0x1df   :  { %2020 = vmatprep.mubr.bf16.mxu1 %v1154_v57 }
 0x1e0   :  { %2021 = vmatmul.mubr.bf16.vlgmr.msra.gmra.mxu1 %v7013_v59  ;;  %2062 = vmatmul.mubr.bf16.vlgmr.msra.gmra.mxu0 %v6913_v6  ;;  %v5755_v6 = vld [vmem:[%s8042_s3 + $0x66c] ss:$16 sps:$4 sm:$0xff]  }
 0x1e1   :  { %2071 = vmatpush1.bf16.msra.mxu1 %v5741_v58  ;;  %2102 = vmatprep.mubr.bf16.mxu1 %v1154_v57  ;;  %v5828_v57 = vld [vmem:[%s8042_s3 + $0x940] ss:$16 sps:$4 sm:$0xff]   ;;  %v5833_v58 = vld [vmem:[%s8042_s3 + $0x924] ss:$16 sps:$4 sm:$0xff]  }
 0x1e2   :  { %2072 = vmatprep.subr.bf16.mxu1 %v5746_v60  ;;  %2912 = vmatpush1.bf16.msra.mxu0 %v5789_v1  ;;  %v5831_v60 = vld [vmem:[%s8042_s3 + $0x920] ss:$16 sps:$4 sm:$0xff]  }
 0x1e3   :  { %2913 = vmatprep.subr.bf16.mxu0 %v5794_v3  ;;  %v5843_v1 = vld [vmem:[%s8042_s3 + $0xac0] ss:$16 sps:$4 sm:$0xff]  }
 0x1e4   :  { %v5849_v3 = vld [vmem:[%s8042_s3 + $0xaa0] ss:$16 sps:$4 sm:$0xff]  }
 0x1e5   :  { %2073 = vmatpush1.bf16.msra.mxu1 %v5744_v61  ;;  %v5836_v61 = vld [vmem:[%s8042_s3 + $0x904] ss:$16 sps:$4 sm:$0xff]  }
 0x1e6   :  { %2074 = vmatprep.subr.bf16.mxu1 %v5749_v62  ;;  %2914 = vmatpush1.bf16.msra.mxu0 %v5792_v5  ;;  %v5834_v62 = vld [vmem:[%s8042_s3 + $0x900] ss:$16 sps:$4 sm:$0xff]  }
 0x1e7   :  { %2915 = vmatprep.subr.bf16.mxu0 %v5797_v7  ;;  %v5855_v5 = vld [vmem:[%s8042_s3 + $0xa80] ss:$16 sps:$4 sm:$0xff]  }
 0x1e8   :  { %v5861_v7 = vld [vmem:[%s8042_s3 + $0xa60] ss:$16 sps:$4 sm:$0xff]  }
 0x1e9   :  { %2075 = vmatpush1.bf16.msra.mxu1 %v5747_v63  ;;  %v5839_v63 = vld [vmem:[%s8042_s3 + $0xae4] ss:$16 sps:$4 sm:$0xff]  }
 0x1ea   :  { %2076 = vmatprep.subr.bf16.mxu1 %v5752_v0  ;;  %2916 = vmatpush1.bf16.msra.mxu0 %v5795_v9  ;;  %v5842_v0 = vld [vmem:[%s8042_s3 + $0x8ec] ss:$16 sps:$4 sm:$0xff]   ;;  %v5867_v9 = vld [vmem:[%s8042_s3 + $0xa40] ss:$16 sps:$4 sm:$0xff]  }
 0x1eb   :  { %2917 = vmatprep.subr.bf16.mxu0 %v5800_v11  ;;  %v5873_v11 = vld [vmem:[%s8042_s3 + $0xa20] ss:$16 sps:$4 sm:$0xff]  }
 0x1ed   :  { %2077 = vmatpush1.bf16.msra.mxu1 %v5750_v4  ;;  %v5851_v4 = vld [vmem:[%s8042_s3 + $0xaa4] ss:$16 sps:$4 sm:$0xff]  }
 0x1ee   :  { %2078 = vmatprep.subr.bf16.mxu1 %v5755_v6  ;;  %2918 = vmatpush1.bf16.msra.mxu0 %v5798_v13  ;;  %v5857_v6 = vld [vmem:[%s8042_s3 + $0xa84] ss:$16 sps:$4 sm:$0xff]   ;;  %v5879_v13 = vld [vmem:[%s8042_s3 + $0xa00] ss:$16 sps:$4 sm:$0xff]  }
 0x1ef   :  { %2919 = vmatprep.subr.bf16.mxu0 %v5803_v19  ;;  %v5885_v19 = vld [vmem:[%s8042_s3 + $0xbe0] ss:$16 sps:$4 sm:$0xff]  }
 0x1f1   :  { %2079 = vmatpush1.bf16.msra.mxu1 %v5753_v8  ;;  %v5863_v8 = vld [vmem:[%s8042_s3 + $0xa64] ss:$16 sps:$4 sm:$0xff]  }
 0x1f2   :  { %2080 = vmatprep.subr.bf16.mxu1 %v5758_v10  ;;  %2920 = vmatpush1.bf16.msra.mxu0 %v5801_v21  ;;  %v5869_v10 = vld [vmem:[%s8042_s3 + $0xa44] ss:$16 sps:$4 sm:$0xff]   ;;  %v5891_v21 = vld [vmem:[%s8042_s3 + $0xbc0] ss:$16 sps:$4 sm:$0xff]  }
 0x1f3   :  { %2921 = vmatprep.subr.bf16.mxu0 %v5806_v23  ;;  %v5897_v23 = vld [vmem:[%s8042_s3 + $0xba0] ss:$16 sps:$4 sm:$0xff]  }
 0x1f5   :  { %2081 = vmatpush1.bf16.msra.mxu1 %v5756_v12  ;;  %v5875_v12 = vld [vmem:[%s8042_s3 + $0xa24] ss:$16 sps:$4 sm:$0xff]  }
 0x1f6   :  { %2082 = vmatprep.subr.bf16.mxu1 %v5761_v14  ;;  %2922 = vmatpush1.bf16.msra.mxu0 %v5804_v25  ;;  %v5881_v14 = vld [vmem:[%s8042_s3 + $0xa04] ss:$16 sps:$4 sm:$0xff]   ;;  %v5903_v25 = vld [vmem:[%s8042_s3 + $0xb80] ss:$16 sps:$4 sm:$0xff]  }
 0x1f7   :  { %2923 = vmatprep.subr.bf16.mxu0 %v5809_v27  ;;  %v5909_v27 = vld [vmem:[%s8042_s3 + $0xb60] ss:$16 sps:$4 sm:$0xff]  }
 0x1f9   :  { %2083 = vmatpush1.bf16.msra.mxu1 %v5759_v20  ;;  %v5887_v20 = vld [vmem:[%s8042_s3 + $0xbe4] ss:$16 sps:$4 sm:$0xff]  }
 0x1fa   :  { %2084 = vmatprep.subr.bf16.mxu1 %v5764_v22  ;;  %2924 = vmatpush1.bf16.msra.mxu0 %v5807_v29  ;;  %v5893_v22 = vld [vmem:[%s8042_s3 + $0xbc4] ss:$16 sps:$4 sm:$0xff]   ;;  %v5915_v29 = vld [vmem:[%s8042_s3 + $0xb40] ss:$16 sps:$4 sm:$0xff]  }
 0x1fb   :  { %2925 = vmatprep.subr.bf16.mxu0 %v5812_v31  ;;  %v5923_v31 = vld [vmem:[%s8042_s3 + $0xb24] ss:$16 sps:$4 sm:$0xff]  }
 0x1fd   :  { %2085 = vmatpush1.bf16.msra.mxu1 %v5762_v24  ;;  %v5899_v24 = vld [vmem:[%s8042_s3 + $0xba4] ss:$16 sps:$4 sm:$0xff]  }
 0x1fe   :  { %2086 = vmatprep.subr.bf16.mxu1 %v5767_v26  ;;  %2926 = vmatpush1.bf16.msra.mxu0 %v5810_v33  ;;  %v5905_v26 = vld [vmem:[%s8042_s3 + $0xb84] ss:$16 sps:$4 sm:$0xff]   ;;  %v5921_v33 = vld [vmem:[%s8042_s3 + $0xb20] ss:$16 sps:$4 sm:$0xff]  }
 0x1ff   :  { %2927 = vmatprep.subr.bf16.mxu0 %v5815_v35  ;;  %v5929_v35 = vld [vmem:[%s8042_s3 + $0xb04] ss:$16 sps:$4 sm:$0xff]  }
 0x201   :  { %2087 = vmatpush2.bf16.msra.mxu1 %v5765_v28  ;;  %v5911_v28 = vld [vmem:[%s8042_s3 + $0xb64] ss:$16 sps:$4 sm:$0xff]  }
 0x202   :  { %2088 = vmatprep.subr.bf16.mxu1 %v5770_v30  ;;  %2928 = vmatpush2.bf16.msra.mxu0 %v5813_v37  ;;  %v5917_v30 = vld [vmem:[%s8042_s3 + $0xb44] ss:$16 sps:$4 sm:$0xff]   ;;  %v5927_v37 = vld [vmem:[%s8042_s3 + $0xb00] ss:$16 sps:$4 sm:$0xff]  }
 0x203   :  { %2929 = vmatprep.subr.bf16.mxu0 %v5818_v40  ;;  %v5935_v40 = vld [vmem:[%s8042_s3 + $0xaec] ss:$16 sps:$4 sm:$0xff]  }
 0x205   :  { %2089 = vmatpush2.bf16.msra.mxu1 %v5768_v32 }
 0x206   :  { %2090 = vmatprep.subr.bf16.mxu1 %v5773_v34  ;;  %2930 = vmatpush2.bf16.msra.mxu0 %v5816_v42 }
 0x207   :  { %2931 = vmatprep.subr.bf16.mxu0 %v5821_v44 }
 0x209   :  { %2091 = vmatpush2.bf16.msra.mxu1 %v5771_v36 }
 0x20a   :  { %2092 = vmatprep.subr.bf16.mxu1 %v5776_v38  ;;  %2932 = vmatpush2.bf16.msra.mxu0 %v5819_v47 }
 0x20b   :  { %2933 = vmatprep.subr.bf16.mxu0 %v5824_v49 }
 0x20d   :  { %2093 = vmatpush2.bf16.msra.mxu1 %v5774_v41  ;;  %v7309_v41 = vld [vmem:[%s8043_s4 + $0x4] sm:$0xf] }
 0x20e   :  { %2094 = vmatprep.subr.bf16.mxu1 %v5779_v43  ;;  %2934 = vmatpush2.bf16.msra.mxu0 %v5822_v51  ;;  %v1290_v42 = vrot.slane %v7309_v41, %v6497_v15  ;;  %v1294_v43 = vrot.slane %v7309_v41, %v6501_v17 }
 0x20f   :  { %2935 = vmatprep.subr.bf16.mxu0 %v5827_v39 }
 0x211   :  { %2095 = vmatpush2.bf16.msra.mxu1 %v5777_v45 }
 0x212   :  { %2096 = vmatprep.subr.bf16.mxu1 %v5782_v48  ;;  %2936 = vmatpush2.bf16.msra.mxu0 %v5825_v53 }
 0x213   :  { %2937 = vmatprep.subr.bf16.mxu0 %v5830_v55 }
 0x215   :  { %2097 = vmatpush2.bf16.msra.mxu1 %v5780_v50 }
 0x216   :  { %2098 = vmatprep.subr.bf16.mxu1 %v5785_v52  ;;  %2938 = vmatpush2.bf16.msra.mxu0 %v5828_v57 }
 0x217   :  { %2939 = vmatprep.subr.bf16.mxu0 %v5833_v58  ;;  %v5840_v58 = vld [vmem:[%s8042_s3 + $0x8e8] ss:$16 sps:$4 sm:$0xff]  }
 0x219   :  { %2099 = vmatpush2.bf16.msra.mxu1 %v5783_v46 }
 0x21a   :  { %2100 = vmatprep.subr.bf16.mxu1 %v5788_v54  ;;  %2940 = vmatpush2.bf16.msra.mxu0 %v5831_v60 }
 0x21b   :  { %2941 = vmatprep.subr.bf16.mxu0 %v5836_v61  ;;  %v5848_v61 = vld [vmem:[%s8042_s3 + $0x8cc] ss:$16 sps:$4 sm:$0xff]  }
 0x21d   :  { %2101 = vmatpush2.bf16.msra.mxu1 %v5786_v56 }
 0x21e   :  { %2942 = vmatpush2.bf16.msra.mxu0 %v5834_v62  ;;  %2952 = vmatprep.subr.bf16.mxu1 %v5839_v63  ;;  %v5846_v62 = vld [vmem:[%s8042_s3 + $0x8c8] ss:$16 sps:$4 sm:$0xff]  }
 0x21f   :  { %2993 = vmatprep.subr.bf16.mxu0 %v5842_v0  ;;  %v5852_v63 = vld [vmem:[%s8042_s3 + $0x8a8] ss:$16 sps:$4 sm:$0xff]   ;;  %v5860_v0 = vld [vmem:[%s8042_s3 + $0x88c] ss:$16 sps:$4 sm:$0xff]  }
 0x220   :  { %2103 = vmatmul.mubr.bf16.vlgmr.msra.gmra.mxu1 %v7013_v59  ;;  %v5837_v59 = vld [vmem:[%s8042_s3 + $0xae0] ss:$16 sps:$4 sm:$0xff]  }
 0x221   :  { %2953 = vmatpush1.bf16.msra.mxu1 %v5837_v59  ;;  %v5854_v59 = vld [vmem:[%s8042_s3 + $0x8ac] ss:$16 sps:$4 sm:$0xff]  }
 0x222   :  { %2954 = vmatprep.subr.bf16.mxu1 %v5845_v2  ;;  %v5866_v2 = vld [vmem:[%s8042_s3 + $0x86c] ss:$16 sps:$4 sm:$0xff]  }
 0x225   :  { %2955 = vmatpush1.bf16.msra.mxu1 %v5843_v1  ;;  %v5858_v1 = vld [vmem:[%s8042_s3 + $0x888] ss:$16 sps:$4 sm:$0xff]  }
 0x226   :  { %2956 = vmatprep.subr.bf16.mxu1 %v5851_v4  ;;  %v5872_v4 = vld [vmem:[%s8042_s3 + $0x84c] ss:$16 sps:$4 sm:$0xff]  }
 0x229   :  { %2957 = vmatpush1.bf16.msra.mxu1 %v5849_v3  ;;  %v5864_v3 = vld [vmem:[%s8042_s3 + $0x868] ss:$16 sps:$4 sm:$0xff]  }
 0x22a   :  { %2958 = vmatprep.subr.bf16.mxu1 %v5857_v6  ;;  %v5878_v6 = vld [vmem:[%s8042_s3 + $0x82c] ss:$16 sps:$4 sm:$0xff]  }
 0x22d   :  { %2959 = vmatpush1.bf16.msra.mxu1 %v5855_v5  ;;  %v5870_v5 = vld [vmem:[%s8042_s3 + $0x848] ss:$16 sps:$4 sm:$0xff]  }
 0x22e   :  { %2960 = vmatprep.subr.bf16.mxu1 %v5863_v8  ;;  %v5884_v8 = vld [vmem:[%s8042_s3 + $0x80c] ss:$16 sps:$4 sm:$0xff]  }
 0x231   :  { %2961 = vmatpush1.bf16.msra.mxu1 %v5861_v7  ;;  %v5876_v7 = vld [vmem:[%s8042_s3 + $0x828] ss:$16 sps:$4 sm:$0xff]  }
 0x232   :  { %2962 = vmatprep.subr.bf16.mxu1 %v5869_v10  ;;  %v5890_v10 = vld [vmem:[%s8042_s3 + $0x9ec] ss:$16 sps:$4 sm:$0xff]  }
 0x235   :  { %2963 = vmatpush1.bf16.msra.mxu1 %v5867_v9  ;;  %v5882_v9 = vld [vmem:[%s8042_s3 + $0x808] ss:$16 sps:$4 sm:$0xff]  }
 0x236   :  { %2964 = vmatprep.subr.bf16.mxu1 %v5875_v12  ;;  %v5896_v12 = vld [vmem:[%s8042_s3 + $0x9cc] ss:$16 sps:$4 sm:$0xff]  }
 0x239   :  { %2965 = vmatpush1.bf16.msra.mxu1 %v5873_v11  ;;  %v5888_v11 = vld [vmem:[%s8042_s3 + $0x9e8] ss:$16 sps:$4 sm:$0xff]  }
 0x23a   :  { %2966 = vmatprep.subr.bf16.mxu1 %v5881_v14  ;;  %v5902_v14 = vld [vmem:[%s8042_s3 + $0x9ac] ss:$16 sps:$4 sm:$0xff]  }
 0x23d   :  { %2967 = vmatpush1.bf16.msra.mxu1 %v5879_v13  ;;  %v5894_v13 = vld [vmem:[%s8042_s3 + $0x9c8] ss:$16 sps:$4 sm:$0xff]  }
 0x23e   :  { %2968 = vmatprep.subr.bf16.mxu1 %v5887_v20  ;;  %v5908_v20 = vld [vmem:[%s8042_s3 + $0x98c] ss:$16 sps:$4 sm:$0xff]  }
 0x241   :  { %2969 = vmatpush2.bf16.msra.mxu1 %v5885_v19  ;;  %v5900_v19 = vld [vmem:[%s8042_s3 + $0x9a8] ss:$16 sps:$4 sm:$0xff]  }
 0x242   :  { %2970 = vmatprep.subr.bf16.mxu1 %v5893_v22  ;;  %v5914_v22 = vld [vmem:[%s8042_s3 + $0x96c] ss:$16 sps:$4 sm:$0xff]  }
 0x245   :  { %2971 = vmatpush2.bf16.msra.mxu1 %v5891_v21  ;;  %v5906_v21 = vld [vmem:[%s8042_s3 + $0x988] ss:$16 sps:$4 sm:$0xff]  }
 0x246   :  { %2972 = vmatprep.subr.bf16.mxu1 %v5899_v24  ;;  %v5920_v24 = vld [vmem:[%s8042_s3 + $0x94c] ss:$16 sps:$4 sm:$0xff]  }
 0x249   :  { %2973 = vmatpush2.bf16.msra.mxu1 %v5897_v23  ;;  %v5912_v23 = vld [vmem:[%s8042_s3 + $0x968] ss:$16 sps:$4 sm:$0xff]  }
 0x24a   :  { %2974 = vmatprep.subr.bf16.mxu1 %v5905_v26  ;;  %v5918_v26 = vld [vmem:[%s8042_s3 + $0x948] ss:$16 sps:$4 sm:$0xff]  }
 0x24d   :  { %2975 = vmatpush2.bf16.msra.mxu1 %v5903_v25  ;;  %v1298_v25 = vrot.slane %v7309_v41, %v6499_v16 }
 0x24e   :  { %2976 = vmatprep.subr.bf16.mxu1 %v5911_v28  ;;  %v1302_v28 = vrot.slane %v7309_v41, %v6503_v18 }
 0x251   :  { %2977 = vmatpush2.bf16.msra.mxu1 %v5909_v27  ;;  %v5926_v27 = vld [vmem:[%s8042_s3 + $0x92c] ss:$16 sps:$4 sm:$0xff]  }
 0x252   :  { %2978 = vmatprep.subr.bf16.mxu1 %v5917_v30  ;;  %v5924_v30 = vld [vmem:[%s8042_s3 + $0x928] ss:$16 sps:$4 sm:$0xff]  }
 0x255   :  { %2979 = vmatpush2.bf16.msra.mxu1 %v5915_v29 }
 0x256   :  { %2980 = vmatprep.subr.bf16.mxu1 %v5923_v31 }
 0x259   :  { %2981 = vmatpush2.bf16.msra.mxu1 %v5921_v33 }
 0x25a   :  { %2982 = vmatprep.subr.bf16.mxu1 %v5929_v35 }
 0x25d   :  { %2983 = vmatpush2.bf16.msra.mxu1 %v5927_v37  ;;  %v5930_v37 = vld [vmem:[%s8042_s3 + $0x908] ss:$16 sps:$4 sm:$0xff]  }
 0x25e   :  { %3034 = vmatprep.subr.bf16.mxu1 %v5935_v40 }
 0x260   :  { %v1981_v32 = vpop.f32.mrf.mxu0 }
 0x261   :  { %v1982_v44 = vadd.f32 %v1981_v32, %v1290_v42  ;;  %v5932_v32 = vld [vmem:[%s8042_s3 + $0x90c] ss:$16 sps:$4 sm:$0xff]  }
 0x262   :  { %v1983_v34 = vpop.f32.mrf.mxu0 }
 0x263   :  { %v1984_v48 = vadd.f32 %v1983_v34, %v1294_v43 }
 0x264   :  { %v1985_v36 = vpop.f32.mrf.mxu0 }
 0x266   :  { %v1986_v38 = vpop.f32.mrf.mxu0 }
 0x2a0   :  { %v2022_v45 = vpop.f32.mrf.mxu1  ;;  %v7315_v47 = vpop.f32.mrf.mxu0 }
 0x2a1   :  { %v2023_v49 = vadd.f32 %v2022_v45, %v1982_v44  ;;  %v2064_v29 = vadd.f32 %v7315_v47, %v1298_v25  ;;  %v5933_v44 = vld [vmem:[%s8042_s3 + $0xae8] ss:$16 sps:$4 sm:$0xff]   ;;  %v5938_v47 = vld [vmem:[%s8042_s3 + $0xacc] ss:$16 sps:$4 sm:$0xff]  }
 0x2a2   :  { %v2024_v50 = vpop.f32.mrf.mxu1  ;;  %v7317_v51 = vpop.f32.mrf.mxu0  ;;  %v5966_v25 = vld [vmem:[%s8042_s3 + $0xb88] ss:$16 sps:$4 sm:$0xff]  }
 0x2a3   :  { %v2025_v52 = vadd.f32 %v2024_v50, %v1984_v48  ;;  %v2111_v39 = vmax.f32 %v2023_v49, 0.0  ;;  %v2066_v33 = vadd.f32 %v7317_v51, %v1302_v28  ;;  %v5936_v48 = vld [vmem:[%s8042_s3 + $0xac8] ss:$16 sps:$4 sm:$0xff]   ;;  %v5941_v49 = vld [vmem:[%s8042_s3 + $0xaac] ss:$16 sps:$4 sm:$0xff]  }
 0x2a4   :  { %v2026_v46 = vpop.f32.mrf.mxu1  ;;  %v2067_v53 = vpop.f32.mrf.mxu0  ;;  %v5939_v50 = vld [vmem:[%s8042_s3 + $0xaa8] ss:$16 sps:$4 sm:$0xff]   ;;  %v5944_v51 = vld [vmem:[%s8042_s3 + $0xa8c] ss:$16 sps:$4 sm:$0xff]   ;;  %v6013_v28 = vld [vmem:[%s8042_s3 + $0xda4] ss:$16 sps:$4 sm:$0xff]  }
 0x2a5   :  { %v2112_v54 = vmax.f32 %v2025_v52, 0.0  ;;  %v7322_v60 = vpack.c.bf16 %v2111_v39, %v2111_v39  ;;  %v5981_v52 = vld [vmem:[%s8042_s3 + $0xce0] ss:$16 sps:$4 sm:$0xff]   ;;  %v5983_v39 = vld [vmem:[%s8042_s3 + $0xce4] ss:$16 sps:$4 sm:$0xff]  }
 0x2a6   :  { %v2027_v55 = vpop.f32.mrf.mxu1  ;;  %v2068_v56 = vpop.f32.mrf.mxu0  ;;  %v5986_v46 = vld [vmem:[%s8042_s3 + $0xcc4] ss:$16 sps:$4 sm:$0xff]   ;;  %v5942_v53 = vld [vmem:[%s8042_s3 + $0xa88] ss:$16 sps:$4 sm:$0xff]  }
 0x2a7   :  { %v2116_v57 = vpack.c.bf16 %v2112_v54, %v2112_v54  ;;  %v5984_v54 = vld [vmem:[%s8042_s3 + $0xcc0] ss:$16 sps:$4 sm:$0xff]   ;;  %v5947_v55 = vld [vmem:[%s8042_s3 + $0xa6c] ss:$16 sps:$4 sm:$0xff]   ;;  %v5989_v56 = vld [vmem:[%s8042_s3 + $0xca4] ss:$16 sps:$4 sm:$0xff]  }
 0x2a9   :  { %2943 = vmatprep.mubr.bf16.mxu0 %v2116_v57 }
 0x2aa   :  { %2944 = vmatmul.mubr.bf16.vlgmr.msra.gmra.mxu0 %v7322_v60 }
 0x2ab   :  { %2994 = vmatpush1.bf16.msra.mxu0 %v5840_v58  ;;  %3025 = vmatprep.mubr.bf16.mxu0 %v2116_v57  ;;  %v5945_v57 = vld [vmem:[%s8042_s3 + $0xa68] ss:$16 sps:$4 sm:$0xff]   ;;  %v5987_v58 = vld [vmem:[%s8042_s3 + $0xca0] ss:$16 sps:$4 sm:$0xff]  }
 0x2ac   :  { %2995 = vmatprep.subr.bf16.mxu0 %v5848_v61  ;;  %v5992_v61 = vld [vmem:[%s8042_s3 + $0xc84] ss:$16 sps:$4 sm:$0xff]  }
 0x2af   :  { %2996 = vmatpush1.bf16.msra.mxu0 %v5846_v62  ;;  %v5948_v62 = vld [vmem:[%s8042_s3 + $0xa48] ss:$16 sps:$4 sm:$0xff]  }
 0x2b0   :  { %2997 = vmatprep.subr.bf16.mxu0 %v5854_v59  ;;  %v5990_v59 = vld [vmem:[%s8042_s3 + $0xc80] ss:$16 sps:$4 sm:$0xff]  }
 0x2b3   :  { %2998 = vmatpush1.bf16.msra.mxu0 %v5852_v63  ;;  %v5953_v63 = vld [vmem:[%s8042_s3 + $0xa2c] ss:$16 sps:$4 sm:$0xff]  }
 0x2b4   :  { %2999 = vmatprep.subr.bf16.mxu0 %v5860_v0  ;;  %v5995_v0 = vld [vmem:[%s8042_s3 + $0xc64] ss:$16 sps:$4 sm:$0xff]  }
 0x2b7   :  { %3000 = vmatpush1.bf16.msra.mxu0 %v5858_v1  ;;  %v5951_v1 = vld [vmem:[%s8042_s3 + $0xa28] ss:$16 sps:$4 sm:$0xff]  }
 0x2b8   :  { %3001 = vmatprep.subr.bf16.mxu0 %v5866_v2  ;;  %v5993_v2 = vld [vmem:[%s8042_s3 + $0xc60] ss:$16 sps:$4 sm:$0xff]  }
 0x2bb   :  { %3002 = vmatpush1.bf16.msra.mxu0 %v5864_v3  ;;  %v5956_v3 = vld [vmem:[%s8042_s3 + $0xa0c] ss:$16 sps:$4 sm:$0xff]  }
 0x2bc   :  { %3003 = vmatprep.subr.bf16.mxu0 %v5872_v4  ;;  %v5998_v4 = vld [vmem:[%s8042_s3 + $0xc44] ss:$16 sps:$4 sm:$0xff]  }
 0x2bf   :  { %3004 = vmatpush1.bf16.msra.mxu0 %v5870_v5  ;;  %v5954_v5 = vld [vmem:[%s8042_s3 + $0xa08] ss:$16 sps:$4 sm:$0xff]  }
 0x2c0   :  { %3005 = vmatprep.subr.bf16.mxu0 %v5878_v6  ;;  %v5996_v6 = vld [vmem:[%s8042_s3 + $0xc40] ss:$16 sps:$4 sm:$0xff]  }
 0x2c3   :  { %3006 = vmatpush1.bf16.msra.mxu0 %v5876_v7  ;;  %v5959_v7 = vld [vmem:[%s8042_s3 + $0xbec] ss:$16 sps:$4 sm:$0xff]  }
 0x2c4   :  { %3007 = vmatprep.subr.bf16.mxu0 %v5884_v8  ;;  %v6001_v8 = vld [vmem:[%s8042_s3 + $0xc24] ss:$16 sps:$4 sm:$0xff]  }
 0x2c7   :  { %3008 = vmatpush1.bf16.msra.mxu0 %v5882_v9  ;;  %v5957_v9 = vld [vmem:[%s8042_s3 + $0xbe8] ss:$16 sps:$4 sm:$0xff]  }
 0x2c8   :  { %3009 = vmatprep.subr.bf16.mxu0 %v5890_v10  ;;  %v5999_v10 = vld [vmem:[%s8042_s3 + $0xc20] ss:$16 sps:$4 sm:$0xff]  }
 0x2cb   :  { %3010 = vmatpush2.bf16.msra.mxu0 %v5888_v11  ;;  %v5962_v11 = vld [vmem:[%s8042_s3 + $0xbcc] ss:$16 sps:$4 sm:$0xff]  }
 0x2cc   :  { %3011 = vmatprep.subr.bf16.mxu0 %v5896_v12  ;;  %v6004_v12 = vld [vmem:[%s8042_s3 + $0xc04] ss:$16 sps:$4 sm:$0xff]  }
 0x2cf   :  { %3012 = vmatpush2.bf16.msra.mxu0 %v5894_v13  ;;  %v5960_v13 = vld [vmem:[%s8042_s3 + $0xbc8] ss:$16 sps:$4 sm:$0xff]  }
 0x2d0   :  { %3013 = vmatprep.subr.bf16.mxu0 %v5902_v14  ;;  %v6002_v14 = vld [vmem:[%s8042_s3 + $0xc00] ss:$16 sps:$4 sm:$0xff]  }
 0x2d3   :  { %3014 = vmatpush2.bf16.msra.mxu0 %v5900_v19  ;;  %v5965_v19 = vld [vmem:[%s8042_s3 + $0xbac] ss:$16 sps:$4 sm:$0xff]  }
 0x2d4   :  { %3015 = vmatprep.subr.bf16.mxu0 %v5908_v20  ;;  %v6007_v20 = vld [vmem:[%s8042_s3 + $0xde4] ss:$16 sps:$4 sm:$0xff]  }
 0x2d7   :  { %3016 = vmatpush2.bf16.msra.mxu0 %v5906_v21  ;;  %v5963_v21 = vld [vmem:[%s8042_s3 + $0xba8] ss:$16 sps:$4 sm:$0xff]  }
 0x2d8   :  { %3017 = vmatprep.subr.bf16.mxu0 %v5914_v22  ;;  %v6005_v22 = vld [vmem:[%s8042_s3 + $0xde0] ss:$16 sps:$4 sm:$0xff]  }
 0x2db   :  { %3018 = vmatpush2.bf16.msra.mxu0 %v5912_v23  ;;  %v5968_v23 = vld [vmem:[%s8042_s3 + $0xb8c] ss:$16 sps:$4 sm:$0xff]  }
 0x2dc   :  { %3019 = vmatprep.subr.bf16.mxu0 %v5920_v24  ;;  %v6010_v24 = vld [vmem:[%s8042_s3 + $0xdc4] ss:$16 sps:$4 sm:$0xff]  }
 0x2df   :  { %3020 = vmatpush2.bf16.msra.mxu0 %v5918_v26  ;;  %v6008_v26 = vld [vmem:[%s8042_s3 + $0xdc0] ss:$16 sps:$4 sm:$0xff]  }
 0x2e0   :  { %v2104_v31 = vpop.f32.mrf.mxu1  ;;  %3021 = vmatprep.subr.bf16.mxu0 %v5926_v27  ;;  %v5971_v27 = vld [vmem:[%s8042_s3 + $0xb6c] ss:$16 sps:$4 sm:$0xff]  }
 0x2e1   :  { %v2105_v34 = vadd.f32 %v2104_v31, %v2064_v29  ;;  %v5969_v29 = vld [vmem:[%s8042_s3 + $0xb68] ss:$16 sps:$4 sm:$0xff]   ;;  %v5974_v31 = vld [vmem:[%s8042_s3 + $0xb4c] ss:$16 sps:$4 sm:$0xff]  }
 0x2e2   :  { %v2106_v35 = vpop.f32.mrf.mxu1 }
 0x2e3   :  { %v2107_v36 = vadd.f32 %v2106_v35, %v2066_v33  ;;  %3022 = vmatpush2.bf16.msra.mxu0 %v5924_v30  ;;  %v2113_v38 = vmax.f32 %v2105_v34, 0.0  ;;  %v6011_v30 = vld [vmem:[%s8042_s3 + $0xda0] ss:$16 sps:$4 sm:$0xff]   ;;  %v5972_v33 = vld [vmem:[%s8042_s3 + $0xb48] ss:$16 sps:$4 sm:$0xff]  }
 0x2e4   :  { %v2108_v40 = vpop.f32.mrf.mxu1  ;;  %3023 = vmatprep.subr.bf16.mxu0 %v5932_v32  ;;  %v6016_v32 = vld [vmem:[%s8042_s3 + $0xd84] ss:$16 sps:$4 sm:$0xff]   ;;  %v6014_v34 = vld [vmem:[%s8042_s3 + $0xd80] ss:$16 sps:$4 sm:$0xff]   ;;  %v5977_v35 = vld [vmem:[%s8042_s3 + $0xb2c] ss:$16 sps:$4 sm:$0xff]  }
 0x2e5   :  { %v2114_v41 = vmax.f32 %v2107_v36, 0.0  ;;  %v7424_v45 = vpack.c.bf16 %v2113_v38, %v2113_v38  ;;  %v6019_v36 = vld [vmem:[%s8042_s3 + $0xd64] ss:$16 sps:$4 sm:$0xff]   ;;  %v6017_v38 = vld [vmem:[%s8042_s3 + $0xd60] ss:$16 sps:$4 sm:$0xff]  }
 0x2e6   :  { %v2109_v42 = vpop.f32.mrf.mxu1  ;;  %v5980_v40 = vld [vmem:[%s8042_s3 + $0xb0c] ss:$16 sps:$4 sm:$0xff]  }
 0x2e7   :  { %v2118_v43 = vpack.c.bf16 %v2114_v41, %v2114_v41  ;;  %3024 = vmatpush2.bf16.msra.mxu0 %v5930_v37  ;;  %v5975_v37 = vld [vmem:[%s8042_s3 + $0xb28] ss:$16 sps:$4 sm:$0xff]   ;;  %v6022_v41 = vld [vmem:[%s8042_s3 + $0xd44] ss:$16 sps:$4 sm:$0xff]  }
 0x2e8   :  { %3875 = vmatprep.subr.bf16.mxu0 %v5983_v39  ;;  %v5978_v42 = vld [vmem:[%s8042_s3 + $0xb08] ss:$16 sps:$4 sm:$0xff]   ;;  %v6037_v39 = vld [vmem:[%s8042_s3 + $0xec4] ss:$16 sps:$4 sm:$0xff]  }
 0x2e9   :  { %2984 = vmatprep.mubr.bf16.mxu1 %v2118_v43 }
 0x2ea   :  { %2985 = vmatmul.mubr.bf16.vlgmr.msra.gmra.mxu1 %v7424_v45  ;;  %3026 = vmatmul.mubr.bf16.vlgmr.msra.gmra.mxu0 %v7322_v60  ;;  %v5950_v60 = vld [vmem:[%s8042_s3 + $0xa4c] ss:$16 sps:$4 sm:$0xff]  }
 0x2eb   :  { %3035 = vmatpush1.bf16.msra.mxu1 %v5933_v44  ;;  %3066 = vmatprep.mubr.bf16.mxu1 %v2118_v43  ;;  %v6020_v43 = vld [vmem:[%s8042_s3 + $0xd40] ss:$16 sps:$4 sm:$0xff]   ;;  %v6025_v44 = vld [vmem:[%s8042_s3 + $0xd24] ss:$16 sps:$4 sm:$0xff]  }
 0x2ec   :  { %3036 = vmatprep.subr.bf16.mxu1 %v5938_v47  ;;  %3876 = vmatpush1.bf16.msra.mxu0 %v5981_v52  ;;  %v6023_v47 = vld [vmem:[%s8042_s3 + $0xd20] ss:$16 sps:$4 sm:$0xff]  }
 0x2ed   :  { %3877 = vmatprep.subr.bf16.mxu0 %v5986_v46  ;;  %v6035_v52 = vld [vmem:[%s8042_s3 + $0xec0] ss:$16 sps:$4 sm:$0xff]  }
 0x2ee   :  { %v6041_v46 = vld [vmem:[%s8042_s3 + $0xea0] ss:$16 sps:$4 sm:$0xff]  }
 0x2ef   :  { %3037 = vmatpush1.bf16.msra.mxu1 %v5936_v48  ;;  %v6028_v48 = vld [vmem:[%s8042_s3 + $0xd04] ss:$16 sps:$4 sm:$0xff]  }
 0x2f0   :  { %3038 = vmatprep.subr.bf16.mxu1 %v5941_v49  ;;  %3878 = vmatpush1.bf16.msra.mxu0 %v5984_v54  ;;  %v6026_v49 = vld [vmem:[%s8042_s3 + $0xd00] ss:$16 sps:$4 sm:$0xff]  }
 0x2f1   :  { %3879 = vmatprep.subr.bf16.mxu0 %v5989_v56  ;;  %v6047_v54 = vld [vmem:[%s8042_s3 + $0xe80] ss:$16 sps:$4 sm:$0xff]  }
 0x2f2   :  { %v6053_v56 = vld [vmem:[%s8042_s3 + $0xe60] ss:$16 sps:$4 sm:$0xff]  }
 0x2f3   :  { %3039 = vmatpush1.bf16.msra.mxu1 %v5939_v50  ;;  %v6031_v50 = vld [vmem:[%s8042_s3 + $0xee4] ss:$16 sps:$4 sm:$0xff]  }
 0x2f4   :  { %3040 = vmatprep.subr.bf16.mxu1 %v5944_v51  ;;  %3880 = vmatpush1.bf16.msra.mxu0 %v5987_v58  ;;  %v6034_v51 = vld [vmem:[%s8042_s3 + $0xcec] ss:$16 sps:$4 sm:$0xff]   ;;  %v6059_v58 = vld [vmem:[%s8042_s3 + $0xe40] ss:$16 sps:$4 sm:$0xff]  }
 0x2f5   :  { %3881 = vmatprep.subr.bf16.mxu0 %v5992_v61  ;;  %v6065_v61 = vld [vmem:[%s8042_s3 + $0xe20] ss:$16 sps:$4 sm:$0xff]  }
 0x2f7   :  { %3041 = vmatpush1.bf16.msra.mxu1 %v5942_v53  ;;  %v6043_v53 = vld [vmem:[%s8042_s3 + $0xea4] ss:$16 sps:$4 sm:$0xff]  }
 0x2f8   :  { %3042 = vmatprep.subr.bf16.mxu1 %v5947_v55  ;;  %3882 = vmatpush1.bf16.msra.mxu0 %v5990_v59  ;;  %v6049_v55 = vld [vmem:[%s8042_s3 + $0xe84] ss:$16 sps:$4 sm:$0xff]   ;;  %v6071_v59 = vld [vmem:[%s8042_s3 + $0xe00] ss:$16 sps:$4 sm:$0xff]  }
 0x2f9   :  { %3883 = vmatprep.subr.bf16.mxu0 %v5995_v0  ;;  %v6077_v0 = vld [vmem:[%s8042_s3 + $0xfe0] ss:$16 sps:$4 sm:$0xff]  }
 0x2fb   :  { %3043 = vmatpush1.bf16.msra.mxu1 %v5945_v57  ;;  %v6055_v57 = vld [vmem:[%s8042_s3 + $0xe64] ss:$16 sps:$4 sm:$0xff]  }
 0x2fc   :  { %3044 = vmatprep.subr.bf16.mxu1 %v5950_v60  ;;  %3884 = vmatpush1.bf16.msra.mxu0 %v5993_v2  ;;  %v6061_v60 = vld [vmem:[%s8042_s3 + $0xe44] ss:$16 sps:$4 sm:$0xff]   ;;  %v6083_v2 = vld [vmem:[%s8042_s3 + $0xfc0] ss:$16 sps:$4 sm:$0xff]  }
 0x2fd   :  { %3885 = vmatprep.subr.bf16.mxu0 %v5998_v4  ;;  %v6089_v4 = vld [vmem:[%s8042_s3 + $0xfa0] ss:$16 sps:$4 sm:$0xff]  }
 0x2ff   :  { %3045 = vmatpush1.bf16.msra.mxu1 %v5948_v62  ;;  %v6067_v62 = vld [vmem:[%s8042_s3 + $0xe24] ss:$16 sps:$4 sm:$0xff]  }
 0x300   :  { %3046 = vmatprep.subr.bf16.mxu1 %v5953_v63  ;;  %3886 = vmatpush1.bf16.msra.mxu0 %v5996_v6  ;;  %v6073_v63 = vld [vmem:[%s8042_s3 + $0xe04] ss:$16 sps:$4 sm:$0xff]   ;;  %v6095_v6 = vld [vmem:[%s8042_s3 + $0xf80] ss:$16 sps:$4 sm:$0xff]  }
 0x301   :  { %3887 = vmatprep.subr.bf16.mxu0 %v6001_v8  ;;  %v6101_v8 = vld [vmem:[%s8042_s3 + $0xf60] ss:$16 sps:$4 sm:$0xff]  }
 0x303   :  { %3047 = vmatpush1.bf16.msra.mxu1 %v5951_v1  ;;  %v6079_v1 = vld [vmem:[%s8042_s3 + $0xfe4] ss:$16 sps:$4 sm:$0xff]  }
 0x304   :  { %3048 = vmatprep.subr.bf16.mxu1 %v5956_v3  ;;  %3888 = vmatpush1.bf16.msra.mxu0 %v5999_v10  ;;  %v6085_v3 = vld [vmem:[%s8042_s3 + $0xfc4] ss:$16 sps:$4 sm:$0xff]   ;;  %v6107_v10 = vld [vmem:[%s8042_s3 + $0xf40] ss:$16 sps:$4 sm:$0xff]  }
 0x305   :  { %3889 = vmatprep.subr.bf16.mxu0 %v6004_v12  ;;  %v6115_v12 = vld [vmem:[%s8042_s3 + $0xf24] ss:$16 sps:$4 sm:$0xff]  }
 0x307   :  { %3049 = vmatpush1.bf16.msra.mxu1 %v5954_v5  ;;  %v6091_v5 = vld [vmem:[%s8042_s3 + $0xfa4] ss:$16 sps:$4 sm:$0xff]  }
 0x308   :  { %3050 = vmatprep.subr.bf16.mxu1 %v5959_v7  ;;  %3890 = vmatpush1.bf16.msra.mxu0 %v6002_v14  ;;  %v6097_v7 = vld [vmem:[%s8042_s3 + $0xf84] ss:$16 sps:$4 sm:$0xff]   ;;  %v6113_v14 = vld [vmem:[%s8042_s3 + $0xf20] ss:$16 sps:$4 sm:$0xff]  }
 0x309   :  { %3891 = vmatprep.subr.bf16.mxu0 %v6007_v20  ;;  %v6121_v20 = vld [vmem:[%s8042_s3 + $0xf04] ss:$16 sps:$4 sm:$0xff]  }
 0x30b   :  { %3051 = vmatpush2.bf16.msra.mxu1 %v5957_v9  ;;  %v6103_v9 = vld [vmem:[%s8042_s3 + $0xf64] ss:$16 sps:$4 sm:$0xff]  }
 0x30c   :  { %3052 = vmatprep.subr.bf16.mxu1 %v5962_v11  ;;  %3892 = vmatpush2.bf16.msra.mxu0 %v6005_v22  ;;  %v6109_v11 = vld [vmem:[%s8042_s3 + $0xf44] ss:$16 sps:$4 sm:$0xff]   ;;  %v6119_v22 = vld [vmem:[%s8042_s3 + $0xf00] ss:$16 sps:$4 sm:$0xff]  }
 0x30d   :  { %3893 = vmatprep.subr.bf16.mxu0 %v6010_v24  ;;  %v6127_v24 = vld [vmem:[%s8042_s3 + $0xeec] ss:$16 sps:$4 sm:$0xff]  }
 0x30f   :  { %3053 = vmatpush2.bf16.msra.mxu1 %v5960_v13 }
 0x310   :  { %3054 = vmatprep.subr.bf16.mxu1 %v5965_v19  ;;  %3894 = vmatpush2.bf16.msra.mxu0 %v6008_v26 }
 0x311   :  { %3895 = vmatprep.subr.bf16.mxu0 %v6013_v28 }
 0x313   :  { %3055 = vmatpush2.bf16.msra.mxu1 %v5963_v21 }
 0x314   :  { %3056 = vmatprep.subr.bf16.mxu1 %v5968_v23  ;;  %3896 = vmatpush2.bf16.msra.mxu0 %v6011_v30 }
 0x315   :  { %3897 = vmatprep.subr.bf16.mxu0 %v6016_v32 }
 0x317   :  { %3057 = vmatpush2.bf16.msra.mxu1 %v5966_v25  ;;  %v7720_v25 = vld [vmem:[%s8043_s4 + $0x8] sm:$0xf] }
 0x318   :  { %3058 = vmatprep.subr.bf16.mxu1 %v5971_v27  ;;  %3898 = vmatpush2.bf16.msra.mxu0 %v6014_v34  ;;  %v2254_v26 = vrot.slane %v7720_v25, %v6497_v15  ;;  %v2258_v27 = vrot.slane %v7720_v25, %v6501_v17 }
 0x319   :  { %3899 = vmatprep.subr.bf16.mxu0 %v6019_v36 }
 0x31b   :  { %3059 = vmatpush2.bf16.msra.mxu1 %v5969_v29 }
 0x31c   :  { %3060 = vmatprep.subr.bf16.mxu1 %v5974_v31  ;;  %3900 = vmatpush2.bf16.msra.mxu0 %v6017_v38 }
 0x31d   :  { %3901 = vmatprep.subr.bf16.mxu0 %v6022_v41 }
 0x31f   :  { %3061 = vmatpush2.bf16.msra.mxu1 %v5972_v33 }
 0x320   :  { %3062 = vmatprep.subr.bf16.mxu1 %v5977_v35  ;;  %3902 = vmatpush2.bf16.msra.mxu0 %v6020_v43 }
 0x321   :  { %3903 = vmatprep.subr.bf16.mxu0 %v6025_v44  ;;  %v6032_v44 = vld [vmem:[%s8042_s3 + $0xce8] ss:$16 sps:$4 sm:$0xff]  }
 0x323   :  { %3063 = vmatpush2.bf16.msra.mxu1 %v5975_v37 }
 0x324   :  { %3064 = vmatprep.subr.bf16.mxu1 %v5980_v40  ;;  %3904 = vmatpush2.bf16.msra.mxu0 %v6023_v47 }
 0x325   :  { %3905 = vmatprep.subr.bf16.mxu0 %v6028_v48  ;;  %v6040_v48 = vld [vmem:[%s8042_s3 + $0xccc] ss:$16 sps:$4 sm:$0xff]  }
 0x327   :  { %3065 = vmatpush2.bf16.msra.mxu1 %v5978_v42 }
 0x328   :  { %3906 = vmatpush2.bf16.msra.mxu0 %v6026_v49  ;;  %3916 = vmatprep.subr.bf16.mxu1 %v6031_v50  ;;  %v6038_v49 = vld [vmem:[%s8042_s3 + $0xcc8] ss:$16 sps:$4 sm:$0xff]  }
 0x329   :  { %3957 = vmatprep.subr.bf16.mxu0 %v6034_v51  ;;  %v6044_v50 = vld [vmem:[%s8042_s3 + $0xca8] ss:$16 sps:$4 sm:$0xff]   ;;  %v6052_v51 = vld [vmem:[%s8042_s3 + $0xc8c] ss:$16 sps:$4 sm:$0xff]  }
 0x32a   :  { %3067 = vmatmul.mubr.bf16.vlgmr.msra.gmra.mxu1 %v7424_v45  ;;  %v6029_v45 = vld [vmem:[%s8042_s3 + $0xee0] ss:$16 sps:$4 sm:$0xff]  }
 0x32b   :  { %3917 = vmatpush1.bf16.msra.mxu1 %v6029_v45  ;;  %v6046_v45 = vld [vmem:[%s8042_s3 + $0xcac] ss:$16 sps:$4 sm:$0xff]  }
 0x32c   :  { %3918 = vmatprep.subr.bf16.mxu1 %v6037_v39  ;;  %v6058_v39 = vld [vmem:[%s8042_s3 + $0xc6c] ss:$16 sps:$4 sm:$0xff]  }
 0x32f   :  { %3919 = vmatpush1.bf16.msra.mxu1 %v6035_v52  ;;  %v6050_v52 = vld [vmem:[%s8042_s3 + $0xc88] ss:$16 sps:$4 sm:$0xff]  }
 0x330   :  { %3920 = vmatprep.subr.bf16.mxu1 %v6043_v53  ;;  %v6064_v53 = vld [vmem:[%s8042_s3 + $0xc4c] ss:$16 sps:$4 sm:$0xff]  }
 0x333   :  { %3921 = vmatpush1.bf16.msra.mxu1 %v6041_v46  ;;  %v6056_v46 = vld [vmem:[%s8042_s3 + $0xc68] ss:$16 sps:$4 sm:$0xff]  }
 0x334   :  { %3922 = vmatprep.subr.bf16.mxu1 %v6049_v55  ;;  %v6070_v55 = vld [vmem:[%s8042_s3 + $0xc2c] ss:$16 sps:$4 sm:$0xff]  }
 0x337   :  { %3923 = vmatpush1.bf16.msra.mxu1 %v6047_v54  ;;  %v6062_v54 = vld [vmem:[%s8042_s3 + $0xc48] ss:$16 sps:$4 sm:$0xff]  }
 0x338   :  { %3924 = vmatprep.subr.bf16.mxu1 %v6055_v57  ;;  %v6076_v57 = vld [vmem:[%s8042_s3 + $0xc0c] ss:$16 sps:$4 sm:$0xff]  }
 0x33b   :  { %3925 = vmatpush1.bf16.msra.mxu1 %v6053_v56  ;;  %v6068_v56 = vld [vmem:[%s8042_s3 + $0xc28] ss:$16 sps:$4 sm:$0xff]  }
 0x33c   :  { %3926 = vmatprep.subr.bf16.mxu1 %v6061_v60  ;;  %v6082_v60 = vld [vmem:[%s8042_s3 + $0xdec] ss:$16 sps:$4 sm:$0xff]  }
 0x33f   :  { %3927 = vmatpush1.bf16.msra.mxu1 %v6059_v58  ;;  %v6074_v58 = vld [vmem:[%s8042_s3 + $0xc08] ss:$16 sps:$4 sm:$0xff]  }
 0x340   :  { %3928 = vmatprep.subr.bf16.mxu1 %v6067_v62  ;;  %v6088_v62 = vld [vmem:[%s8042_s3 + $0xdcc] ss:$16 sps:$4 sm:$0xff]  }
 0x343   :  { %3929 = vmatpush1.bf16.msra.mxu1 %v6065_v61  ;;  %v6080_v61 = vld [vmem:[%s8042_s3 + $0xde8] ss:$16 sps:$4 sm:$0xff]  }
 0x344   :  { %3930 = vmatprep.subr.bf16.mxu1 %v6073_v63  ;;  %v6094_v63 = vld [vmem:[%s8042_s3 + $0xdac] ss:$16 sps:$4 sm:$0xff]  }
 0x347   :  { %3931 = vmatpush1.bf16.msra.mxu1 %v6071_v59  ;;  %v6086_v59 = vld [vmem:[%s8042_s3 + $0xdc8] ss:$16 sps:$4 sm:$0xff]  }
 0x348   :  { %3932 = vmatprep.subr.bf16.mxu1 %v6079_v1  ;;  %v6100_v1 = vld [vmem:[%s8042_s3 + $0xd8c] ss:$16 sps:$4 sm:$0xff]  }
 0x34b   :  { %3933 = vmatpush2.bf16.msra.mxu1 %v6077_v0  ;;  %v6092_v0 = vld [vmem:[%s8042_s3 + $0xda8] ss:$16 sps:$4 sm:$0xff]  }
 0x34c   :  { %3934 = vmatprep.subr.bf16.mxu1 %v6085_v3  ;;  %v6106_v3 = vld [vmem:[%s8042_s3 + $0xd6c] ss:$16 sps:$4 sm:$0xff]  }
 0x34f   :  { %3935 = vmatpush2.bf16.msra.mxu1 %v6083_v2  ;;  %v6098_v2 = vld [vmem:[%s8042_s3 + $0xd88] ss:$16 sps:$4 sm:$0xff]  }
 0x350   :  { %3936 = vmatprep.subr.bf16.mxu1 %v6091_v5  ;;  %v6112_v5 = vld [vmem:[%s8042_s3 + $0xd4c] ss:$16 sps:$4 sm:$0xff]  }
 0x353   :  { %3937 = vmatpush2.bf16.msra.mxu1 %v6089_v4  ;;  %v6104_v4 = vld [vmem:[%s8042_s3 + $0xd68] ss:$16 sps:$4 sm:$0xff]  }
 0x354   :  { %3938 = vmatprep.subr.bf16.mxu1 %v6097_v7  ;;  %v6110_v7 = vld [vmem:[%s8042_s3 + $0xd48] ss:$16 sps:$4 sm:$0xff]  }
 0x357   :  { %3939 = vmatpush2.bf16.msra.mxu1 %v6095_v6  ;;  %v2262_v6 = vrot.slane %v7720_v25, %v6499_v16 }
 0x358   :  { %3940 = vmatprep.subr.bf16.mxu1 %v6103_v9  ;;  %v2266_v9 = vrot.slane %v7720_v25, %v6503_v18 }
 0x35b   :  { %3941 = vmatpush2.bf16.msra.mxu1 %v6101_v8  ;;  %v6118_v8 = vld [vmem:[%s8042_s3 + $0xd2c] ss:$16 sps:$4 sm:$0xff]  }
 0x35c   :  { %3942 = vmatprep.subr.bf16.mxu1 %v6109_v11  ;;  %v6116_v11 = vld [vmem:[%s8042_s3 + $0xd28] ss:$16 sps:$4 sm:$0xff]  }
 0x35f   :  { %3943 = vmatpush2.bf16.msra.mxu1 %v6107_v10 }
 0x360   :  { %3944 = vmatprep.subr.bf16.mxu1 %v6115_v12 }
 0x363   :  { %3945 = vmatpush2.bf16.msra.mxu1 %v6113_v14 }
 0x364   :  { %3946 = vmatprep.subr.bf16.mxu1 %v6121_v20 }
 0x367   :  { %3947 = vmatpush2.bf16.msra.mxu1 %v6119_v22  ;;  %v6122_v22 = vld [vmem:[%s8042_s3 + $0xd08] ss:$16 sps:$4 sm:$0xff]  }
 0x368   :  { %3998 = vmatprep.subr.bf16.mxu1 %v6127_v24 }
 0x36a   :  { %v2945_v13 = vpop.f32.mrf.mxu0 }
 0x36b   :  { %v2946_v28 = vadd.f32 %v2945_v13, %v2254_v26  ;;  %v6124_v13 = vld [vmem:[%s8042_s3 + $0xd0c] ss:$16 sps:$4 sm:$0xff]  }
 0x36c   :  { %v2947_v19 = vpop.f32.mrf.mxu0 }
 0x36d   :  { %v2948_v31 = vadd.f32 %v2947_v19, %v2258_v27 }
 0x36e   :  { %v2949_v21 = vpop.f32.mrf.mxu0 }
 0x370   :  { %v2950_v23 = vpop.f32.mrf.mxu0 }
 0x3aa   :  { %v2986_v29 = vpop.f32.mrf.mxu1  ;;  %v7726_v30 = vpop.f32.mrf.mxu0 }
 0x3ab   :  { %v2987_v32 = vadd.f32 %v2986_v29, %v2946_v28  ;;  %v3028_v10 = vadd.f32 %v7726_v30, %v2262_v6  ;;  %v6125_v28 = vld [vmem:[%s8042_s3 + $0xee8] ss:$16 sps:$4 sm:$0xff]   ;;  %v6130_v30 = vld [vmem:[%s8042_s3 + $0xecc] ss:$16 sps:$4 sm:$0xff]  }
 0x3ac   :  { %v2988_v33 = vpop.f32.mrf.mxu1  ;;  %v7728_v34 = vpop.f32.mrf.mxu0  ;;  %v6172_v6 = vld [vmem:[%s8042_s3 + $0xf0c] ss:$16 sps:$4 sm:$0xff]  }
 0x3ad   :  { %v2989_v35 = vadd.f32 %v2988_v33, %v2948_v31  ;;  %v3075_v36 = vmax.f32 %v2987_v32, 0.0  ;;  %v3030_v14 = vadd.f32 %v7728_v34, %v2266_v9  ;;  %v6128_v31 = vld [vmem:[%s8042_s3 + $0xec8] ss:$16 sps:$4 sm:$0xff]   ;;  %v6133_v32 = vld [vmem:[%s8042_s3 + $0xeac] ss:$16 sps:$4 sm:$0xff]  }
 0x3ae   :  { %v2990_v37 = vpop.f32.mrf.mxu1  ;;  %v3031_v38 = vpop.f32.mrf.mxu0  ;;  %v6131_v33 = vld [vmem:[%s8042_s3 + $0xea8] ss:$16 sps:$4 sm:$0xff]   ;;  %v6136_v34 = vld [vmem:[%s8042_s3 + $0xe8c] ss:$16 sps:$4 sm:$0xff]  }
 0x3af   :  { %v3076_v40 = vmax.f32 %v2989_v35, 0.0  ;;  %v7733_v47 = vpack.c.bf16 %v3075_v36, %v3075_v36  ;;  %v6173_v35 = vld [vmem:[%s8044_s5 + $0x78] sm:$0xff]   ;;  %v6175_v37 = vld [vmem:[%s8044_s5 + $0x70] sm:$0xff]   ;;  %v6186_v9 = vld [vmem:[%s8044_s5 + $0x8] sm:$0xff]  }
 0x3b0   :  { %v2991_v41 = vpop.f32.mrf.mxu1  ;;  %v3032_v42 = vpop.f32.mrf.mxu0  ;;  %v6174_v36 = vld [vmem:[%s8044_s5 + $0x38] sm:$0xff]  }
 0x3b1   :  { %v3080_v43 = vpack.c.bf16 %v3076_v40, %v3076_v40  ;;  %v6134_v38 = vld [vmem:[%s8042_s3 + $0xe88] ss:$16 sps:$4 sm:$0xff]   ;;  %v6176_v40 = vld [vmem:[%s8044_s5 + $0x30] sm:$0xff]   ;;  %v6139_v41 = vld [vmem:[%s8042_s3 + $0xe6c] ss:$16 sps:$4 sm:$0xff]  }
 0x3b2   :  { %v6177_v42 = vld [vmem:[%s8044_s5 + $0x68] sm:$0xff]  }
 0x3b3   :  { %3907 = vmatprep.mubr.bf16.mxu0 %v3080_v43 }
 0x3b4   :  { %3908 = vmatmul.mubr.bf16.vlgmr.msra.gmra.mxu0 %v7733_v47 }
 0x3b5   :  { %3958 = vmatpush1.bf16.msra.mxu0 %v6032_v44  ;;  %3989 = vmatprep.mubr.bf16.mxu0 %v3080_v43  ;;  %v6137_v43 = vld [vmem:[%s8042_s3 + $0xe68] ss:$16 sps:$4 sm:$0xff]  }
 0x3b6   :  { %3959 = vmatprep.subr.bf16.mxu0 %v6040_v48  ;;  %v6178_v44 = vld [vmem:[%s8044_s5 + $0x28] sm:$0xff]   ;;  %v6179_v48 = vld [vmem:[%s8044_s5 + $0x60] sm:$0xff]  }
 0x3b9   :  { %3960 = vmatpush1.bf16.msra.mxu0 %v6038_v49  ;;  %v6140_v49 = vld [vmem:[%s8042_s3 + $0xe48] ss:$16 sps:$4 sm:$0xff]  }
 0x3ba   :  { %3961 = vmatprep.subr.bf16.mxu0 %v6046_v45  ;;  %v6180_v45 = vld [vmem:[%s8044_s5 + $0x20] sm:$0xff]  }
 0x3bd   :  { %3962 = vmatpush1.bf16.msra.mxu0 %v6044_v50  ;;  %v6145_v50 = vld [vmem:[%s8042_s3 + $0xe2c] ss:$16 sps:$4 sm:$0xff]  }
 0x3be   :  { %3963 = vmatprep.subr.bf16.mxu0 %v6052_v51  ;;  %v6181_v51 = vld [vmem:[%s8044_s5 + $0x58] sm:$0xff]  }
 0x3c1   :  { %3964 = vmatpush1.bf16.msra.mxu0 %v6050_v52  ;;  %v6143_v52 = vld [vmem:[%s8042_s3 + $0xe28] ss:$16 sps:$4 sm:$0xff]  }
 0x3c2   :  { %3965 = vmatprep.subr.bf16.mxu0 %v6058_v39  ;;  %v6182_v39 = vld [vmem:[%s8044_s5 + $0x18] sm:$0xff]  }
 0x3c5   :  { %3966 = vmatpush1.bf16.msra.mxu0 %v6056_v46  ;;  %v6148_v46 = vld [vmem:[%s8042_s3 + $0xe0c] ss:$16 sps:$4 sm:$0xff]  }
 0x3c6   :  { %3967 = vmatprep.subr.bf16.mxu0 %v6064_v53  ;;  %v6183_v53 = vld [vmem:[%s8044_s5 + $0x50] sm:$0xff]  }
 0x3c9   :  { %3968 = vmatpush1.bf16.msra.mxu0 %v6062_v54  ;;  %v6146_v54 = vld [vmem:[%s8042_s3 + $0xe08] ss:$16 sps:$4 sm:$0xff]  }
 0x3ca   :  { %3969 = vmatprep.subr.bf16.mxu0 %v6070_v55  ;;  %v6184_v55 = vld [vmem:[%s8044_s5 + $0x10] sm:$0xff]  }
 0x3cd   :  { %3970 = vmatpush1.bf16.msra.mxu0 %v6068_v56  ;;  %v6151_v56 = vld [vmem:[%s8042_s3 + $0xfec] ss:$16 sps:$4 sm:$0xff]  }
 0x3ce   :  { %3971 = vmatprep.subr.bf16.mxu0 %v6076_v57  ;;  %v6149_v57 = vld [vmem:[%s8042_s3 + $0xfe8] ss:$16 sps:$4 sm:$0xff]  }
 0x3d1   :  { %3972 = vmatpush1.bf16.msra.mxu0 %v6074_v58  ;;  %v6154_v58 = vld [vmem:[%s8042_s3 + $0xfcc] ss:$16 sps:$4 sm:$0xff]  }
 0x3d2   :  { %3973 = vmatprep.subr.bf16.mxu0 %v6082_v60  ;;  %v6152_v60 = vld [vmem:[%s8042_s3 + $0xfc8] ss:$16 sps:$4 sm:$0xff]  }
 0x3d5   :  { %3974 = vmatpush2.bf16.msra.mxu0 %v6080_v61  ;;  %v6157_v61 = vld [vmem:[%s8042_s3 + $0xfac] ss:$16 sps:$4 sm:$0xff]  }
 0x3d6   :  { %3975 = vmatprep.subr.bf16.mxu0 %v6088_v62  ;;  %v6155_v62 = vld [vmem:[%s8042_s3 + $0xfa8] ss:$16 sps:$4 sm:$0xff]  }
 0x3d9   :  { %3976 = vmatpush2.bf16.msra.mxu0 %v6086_v59  ;;  %v6160_v59 = vld [vmem:[%s8042_s3 + $0xf8c] ss:$16 sps:$4 sm:$0xff]  }
 0x3da   :  { %3977 = vmatprep.subr.bf16.mxu0 %v6094_v63  ;;  %v6158_v63 = vld [vmem:[%s8042_s3 + $0xf88] ss:$16 sps:$4 sm:$0xff]  }
 0x3dd   :  { %3978 = vmatpush2.bf16.msra.mxu0 %v6092_v0  ;;  %v6163_v0 = vld [vmem:[%s8042_s3 + $0xf6c] ss:$16 sps:$4 sm:$0xff]  }
 0x3de   :  { %3979 = vmatprep.subr.bf16.mxu0 %v6100_v1  ;;  %v6161_v1 = vld [vmem:[%s8042_s3 + $0xf68] ss:$16 sps:$4 sm:$0xff]  }
 0x3e1   :  { %3980 = vmatpush2.bf16.msra.mxu0 %v6098_v2  ;;  %v6166_v2 = vld [vmem:[%s8042_s3 + $0xf4c] ss:$16 sps:$4 sm:$0xff]  }
 0x3e2   :  { %3981 = vmatprep.subr.bf16.mxu0 %v6106_v3  ;;  %v6164_v3 = vld [vmem:[%s8042_s3 + $0xf48] ss:$16 sps:$4 sm:$0xff]  }
 0x3e5   :  { %3982 = vmatpush2.bf16.msra.mxu0 %v6104_v4  ;;  %v6169_v4 = vld [vmem:[%s8042_s3 + $0xf2c] ss:$16 sps:$4 sm:$0xff]  }
 0x3e6   :  { %3983 = vmatprep.subr.bf16.mxu0 %v6112_v5  ;;  %v6167_v5 = vld [vmem:[%s8042_s3 + $0xf28] ss:$16 sps:$4 sm:$0xff]  }
 0x3e9   :  { %3984 = vmatpush2.bf16.msra.mxu0 %v6110_v7  ;;  %v6170_v7 = vld [vmem:[%s8042_s3 + $0xf08] ss:$16 sps:$4 sm:$0xff]  }
 0x3ea   :  { %v3068_v12 = vpop.f32.mrf.mxu1  ;;  %3985 = vmatprep.subr.bf16.mxu0 %v6118_v8  ;;  %v6185_v8 = vld [vmem:[%s8044_s5 + $0x48] sm:$0xff]  }
 0x3eb   :  { %v3069_v19 = vadd.f32 %v3068_v12, %v3028_v10  ;;  %v6187_v10 = vld [vmem:[%s8044_s5 + $0x40] sm:$0xff]   ;;  %v6189_v12 = vld [vmem:[%s8044_s5 + $0xf8] sm:$0xff]  }
 0x3ec   :  { %v3070_v20 = vpop.f32.mrf.mxu1 }
 0x3ed   :  { %v3071_v21 = vadd.f32 %v3070_v20, %v3030_v14  ;;  %3986 = vmatpush2.bf16.msra.mxu0 %v6116_v11  ;;  %v3077_v23 = vmax.f32 %v3069_v19, 0.0  ;;  %v6188_v11 = vld [vmem:[%s8044_s5] sm:$0xff]   ;;  %v6191_v14 = vld [vmem:[%s8044_s5 + $0xf0] sm:$0xff]   ;;  %v6193_v20 = vld [vmem:[%s8044_s5 + $0xe8] sm:$0xff]  }
 0x3ee   :  { %v3072_v24 = vpop.f32.mrf.mxu1  ;;  %3987 = vmatprep.subr.bf16.mxu0 %v6124_v13  ;;  %v6190_v13 = vld [vmem:[%s8044_s5 + $0xb8] sm:$0xff]   ;;  %v6192_v19 = vld [vmem:[%s8044_s5 + $0xb0] sm:$0xff]  }
 0x3ef   :  { %v3078_v25 = vmax.f32 %v3071_v21, 0.0  ;;  %v7835_v29 = vpack.c.bf16 %v3077_v23, %v3077_v23  ;;  %v6194_v21 = vld [vmem:[%s8044_s5 + $0xa8] sm:$0xff]   ;;  %v6196_v23 = vld [vmem:[%s8044_s5 + $0xa0] sm:$0xff]   ;;  %v6197_v24 = vld [vmem:[%s8044_s5 + $0xd8] sm:$0xff]  }
 0x3f0   :  { %v3073_v26 = vpop.f32.mrf.mxu1 }
 0x3f1   :  { %v3082_v27 = vpack.c.bf16 %v3078_v25, %v3078_v25  ;;  %3988 = vmatpush2.bf16.msra.mxu0 %v6122_v22  ;;  %v6195_v22 = vld [vmem:[%s8044_s5 + $0xe0] sm:$0xff]   ;;  %v6198_v25 = vld [vmem:[%s8044_s5 + $0x98] sm:$0xff]   ;;  %v6199_v26 = vld [vmem:[%s8044_s5 + $0xd0] sm:$0xff]  }
 0x3f2   :  { %5347 = vmatprep.subr.bf16.mxu0 %v6173_v35 }
 0x3f3   :  { %3948 = vmatprep.mubr.bf16.mxu1 %v3082_v27 }
 0x3f4   :  { %3949 = vmatmul.mubr.bf16.vlgmr.msra.gmra.mxu1 %v7835_v29  ;;  %3990 = vmatmul.mubr.bf16.vlgmr.msra.gmra.mxu0 %v7733_v47  ;;  %v6142_v47 = vld [vmem:[%s8042_s3 + $0xe4c] ss:$16 sps:$4 sm:$0xff]  }
 0x3f5   :  { %3999 = vmatpush1.bf16.msra.mxu1 %v6125_v28  ;;  %4030 = vmatprep.mubr.bf16.mxu1 %v3082_v27  ;;  %v6200_v27 = vld [vmem:[%s8044_s5 + $0x90] sm:$0xff]  }
 0x3f6   :  { %4000 = vmatprep.subr.bf16.mxu1 %v6130_v30  ;;  %5348 = vmatpush3.bf16.msra.mxu0 %v6174_v36  ;;  %v6202_v30 = vld [vmem:[%s8044_s5 + $0x88] sm:$0xff]  }
 0x3f7   :  { %5349 = vmatprep.subr.bf16.mxu0 %v6175_v37  ;;  %v5185_v36 = vld [vmem:[%s8043_s4 + $0xc] sm:$0xf] }
 0x3f8   :  { %v3218_v37 = vrot.slane %v5185_v36, %v6497_v15  ;;  %v3226_v15 = vrot.slane %v5185_v36, %v6499_v16 }
 0x3f9   :  { %4001 = vmatpush1.bf16.msra.mxu1 %v6128_v31 }
 0x3fa   :  { %4002 = vmatprep.subr.bf16.mxu1 %v6133_v32  ;;  %5350 = vmatpush3.bf16.msra.mxu0 %v6176_v40 }
 0x3fb   :  { %5351 = vmatprep.subr.bf16.mxu0 %v6177_v42 }
 0x3fd   :  { %4003 = vmatpush1.bf16.msra.mxu1 %v6131_v33  ;;  %v6203_v33 = vld [vmem:[%s8044_s5 + $0xc0] sm:$0xff]  }
 0x3fe   :  { %4004 = vmatprep.subr.bf16.mxu1 %v6136_v34  ;;  %5352 = vmatpush3.bf16.msra.mxu0 %v6178_v44  ;;  %v6204_v34 = vld [vmem:[%s8044_s5 + $0x80] sm:$0xff]  }
 0x3ff   :  { %5353 = vmatprep.subr.bf16.mxu0 %v6179_v48 }
 0x401   :  { %4005 = vmatpush1.bf16.msra.mxu1 %v6134_v38  ;;  %v3222_v38 = vrot.slane %v5185_v36, %v6501_v17  ;;  %v3230_v17 = vrot.slane %v5185_v36, %v6503_v18  ;;  %v5314_v18 = vld [vmem:[%s8045_s6] ss:$0 sm:$0xff] }
 0x402   :  { %4006 = vmatprep.subr.bf16.mxu1 %v6139_v41  ;;  %5354 = vmatpush3.bf16.msra.mxu0 %v6180_v45 }
 0x403   :  { %5355 = vmatprep.subr.bf16.mxu0 %v6181_v51 }
 0x405   :  { %4007 = vmatpush1.bf16.msra.mxu1 %v6137_v43 }
 0x406   :  { %4008 = vmatprep.subr.bf16.mxu1 %v6142_v47  ;;  %5356 = vmatpush3.bf16.msra.mxu0 %v6182_v39 }
 0x407   :  { %5357 = vmatprep.subr.bf16.mxu0 %v6183_v53 }
 0x409   :  { %4009 = vmatpush1.bf16.msra.mxu1 %v6140_v49 }
 0x40a   :  { %4010 = vmatprep.subr.bf16.mxu1 %v6145_v50  ;;  %5358 = vmatpush3.bf16.msra.mxu0 %v6184_v55 }
 0x40b   :  { %5359 = vmatprep.subr.bf16.mxu0 %v6185_v8 }
 0x40d   :  { %4011 = vmatpush1.bf16.msra.mxu1 %v6143_v52 }
 0x40e   :  { %4012 = vmatprep.subr.bf16.mxu1 %v6148_v46  ;;  %5360 = vmatpush3.bf16.msra.mxu0 %v6186_v9 }
 0x40f   :  { %5361 = vmatprep.subr.bf16.mxu0 %v6187_v10 }
 0x411   :  { %4013 = vmatpush1.bf16.msra.mxu1 %v6146_v54 }
 0x412   :  { %4014 = vmatprep.subr.bf16.mxu1 %v6151_v56  ;;  %5362 = vmatpush3.bf16.msra.mxu0 %v6188_v11 }
 0x415   :  { %4015 = vmatpush2.bf16.msra.mxu1 %v6149_v57 }
 0x416   :  { %4016 = vmatprep.subr.bf16.mxu1 %v6154_v58 }
 0x419   :  { %4017 = vmatpush2.bf16.msra.mxu1 %v6152_v60 }
 0x41a   :  { %4018 = vmatprep.subr.bf16.mxu1 %v6157_v61 }
 0x41d   :  { %4019 = vmatpush2.bf16.msra.mxu1 %v6155_v62 }
 0x41e   :  { %4020 = vmatprep.subr.bf16.mxu1 %v6160_v59 }
 0x421   :  { %4021 = vmatpush2.bf16.msra.mxu1 %v6158_v63 }
 0x422   :  { %4022 = vmatprep.subr.bf16.mxu1 %v6163_v0 }
 0x425   :  { %4023 = vmatpush2.bf16.msra.mxu1 %v6161_v1 }
 0x426   :  { %4024 = vmatprep.subr.bf16.mxu1 %v6166_v2 }
 0x429   :  { %4025 = vmatpush2.bf16.msra.mxu1 %v6164_v3 }
 0x42a   :  { %4026 = vmatprep.subr.bf16.mxu1 %v6169_v4 }
 0x42d   :  { %4027 = vmatpush2.bf16.msra.mxu1 %v6167_v5 }
 0x42e   :  { %4028 = vmatprep.subr.bf16.mxu1 %v6172_v6 }
 0x431   :  { %4029 = vmatpush2.bf16.msra.mxu1 %v6170_v7 }
 0x432   :  { %5369 = vmatprep.subr.bf16.mxu1 %v6189_v12 }
 0x434   :  { %4031 = vmatmul.mubr.bf16.vlgmr.msra.gmra.mxu1 %v7835_v29  ;;  %v6201_v29 = vld [vmem:[%s8044_s5 + $0xc8] sm:$0xff]  }
 0x435   :  { %5370 = vmatpush3.bf16.msra.mxu1 %v6190_v13 }
 0x436   :  { %5371 = vmatprep.subr.bf16.mxu1 %v6191_v14 }
 0x439   :  { %5372 = vmatpush3.bf16.msra.mxu1 %v6192_v19 }
 0x43a   :  { %5373 = vmatprep.subr.bf16.mxu1 %v6193_v20 }
 0x43d   :  { %5374 = vmatpush3.bf16.msra.mxu1 %v6194_v21 }
 0x43e   :  { %5375 = vmatprep.subr.bf16.mxu1 %v6195_v22 }
 0x441   :  { %5376 = vmatpush3.bf16.msra.mxu1 %v6196_v23 }
 0x442   :  { %5377 = vmatprep.subr.bf16.mxu1 %v6197_v24 }
 0x445   :  { %5378 = vmatpush3.bf16.msra.mxu1 %v6198_v25 }
 0x446   :  { %5379 = vmatprep.subr.bf16.mxu1 %v6199_v26 }
 0x449   :  { %5380 = vmatpush3.bf16.msra.mxu1 %v6200_v27 }
 0x44a   :  { %5381 = vmatprep.subr.bf16.mxu1 %v6201_v29 }
 0x44d   :  { %5382 = vmatpush3.bf16.msra.mxu1 %v6202_v30 }
 0x44e   :  { %5383 = vmatprep.subr.bf16.mxu1 %v6203_v33 }
 0x451   :  { %5384 = vmatpush3.bf16.msra.mxu1 %v6204_v34 }
 0x474   :  { %v3909_v28 = vpop.f32.mrf.mxu0 }
 0x475   :  { %v3910_v40 = vadd.f32 %v3909_v28, %v3218_v37 }
 0x476   :  { %v3911_v31 = vpop.f32.mrf.mxu0 }
 0x477   :  { %v3912_v43 = vadd.f32 %v3911_v31, %v3222_v38 }
 0x478   :  { %v3913_v32 = vpop.f32.mrf.mxu0 }
 0x47a   :  { %v3914_v35 = vpop.f32.mrf.mxu0 }
 0x4b4   :  { %v3950_v41 = vpop.f32.mrf.mxu1  ;;  %v3991_v42 = vpop.f32.mrf.mxu0 }
 0x4b5   :  { %v3951_v44 = vadd.f32 %v3950_v41, %v3910_v40  ;;  %v3992_v55 = vadd.f32 %v3991_v42, %v3226_v15 }
 0x4b6   :  { %v3952_v47 = vpop.f32.mrf.mxu1  ;;  %v3993_v48 = vpop.f32.mrf.mxu0 }
 0x4b7   :  { %v3953_v49 = vadd.f32 %v3952_v47, %v3912_v43  ;;  %v4039_v45 = vmax.f32 %v3951_v44, 0.0  ;;  %v3994_v57 = vadd.f32 %v3993_v48, %v3230_v17 }
 0x4b8   :  { %v3954_v50 = vpop.f32.mrf.mxu1  ;;  %v3995_v51 = vpop.f32.mrf.mxu0 }
 0x4b9   :  { %v4040_v52 = vmax.f32 %v3953_v49, 0.0  ;;  %v4043_v54 = vpack.c.bf16 %v4039_v45, %v4039_v45 }
 0x4ba   :  { %v3955_v39 = vpop.f32.mrf.mxu1  ;;  %v3996_v46 = vpop.f32.mrf.mxu0 }
 0x4bb   :  { %v4044_v53 = vpack.c.bf16 %v4040_v52, %v4040_v52 }
 0x4bd   :  { %4342 = vmatprep.mubr.bf16.mxu0 %v4044_v53 }
 0x4be   :  { %4343 = vmatmul.mubr.bf16.vlgmr.msra.gmra.mxu0 %v4043_v54 }
 0x4f4   :  { %v4032_v56 = vpop.f32.mrf.mxu1 }
 0x4f5   :  { %v4033_v58 = vadd.f32 %v4032_v56, %v3992_v55 }
 0x4f6   :  { %v4034_v60 = vpop.f32.mrf.mxu1 }
 0x4f7   :  { %v4035_v61 = vadd.f32 %v4034_v60, %v3994_v57  ;;  %v4041_v62 = vmax.f32 %v4033_v58, 0.0 }
 0x4f8   :  { %v4036_v59 = vpop.f32.mrf.mxu1 }
 0x4f9   :  { %v4042_v63 = vmax.f32 %v4035_v61, 0.0  ;;  %v4045_v2 = vpack.c.bf16 %v4041_v62, %v4041_v62 }
 0x4fa   :  { %v4037_v0 = vpop.f32.mrf.mxu1 }
 0x4fb   :  { %v4046_v1 = vpack.c.bf16 %v4042_v63, %v4042_v63 }
 0x4fd   :  { %4382 = vmatprep.mubr.bf16.mxu1 %v4046_v1 }
 0x4fe   :  { %4383 = vmatmul.mubr.bf16.vlgmr.msra.gmra.mxu1 %v4045_v2 }
 0x57e   :  { %v5363_v3 = vpop.f32.mrf.mxu0 }
 0x580   :  { %v5364_v4 = vpop.f32.mrf.mxu0 }
 0x581   :  { %v5365_v6 = vadd.f32 %v5364_v4, %v5363_v3 }
 0x582   :  { %v5366_v5 = vpop.f32.mrf.mxu0 }
 0x583   :  { %v4345_v9 = vadd.f32 %v5365_v6, %v5314_v18 }
 0x584   :  { %v5367_v16 = vpop.f32.mrf.mxu0 }
 0x5be   :  { %v5385_v7 = vpop.f32.mrf.mxu1 }
 0x5c0   :  { %v5386_v8 = vpop.f32.mrf.mxu1 }
 0x5c1   :  { %v5387_v10 = vadd.f32 %v5386_v8, %v5385_v7 }
 0x5c2   :  { %v5388_v11 = vpop.f32.mrf.mxu1 }
 0x5c3   :  { %v4385_v12 = vadd.f32 %v5387_v10, %v4345_v9 }
 0x5c4   :  { %v5389_v13 = vpop.f32.mrf.mxu1 }
 0x5c5   :  { %4390 = vst [vmem:[#allocation2] sm:$0xff] %v4385_v12 }
 0x5c6   :  { %6216 = shalt.err (!%p6213_p4)
}
 0x5c7   :  { %4400 = dma.vmem_to_hbm [thread:$0]  %s4398_s26, 128, %s8046_s7, [#allocation3]  }
 0x5c8   :  { %6225 = dma.done.wait [#allocation3], 128  }
 0x5c9   :  { %6226 = vsyncadd [#allocation3], 4294967168 }
 0x5ca   :  { %4404 = vsyncpa [#allocation3], 1 }

</bundles_post_ra>
